<compile_context>
chip_gen: v7x
topology: tpu7x:2x2x1
jax: 0.10.0
libtpu: 0.0.40
codegen_flags: <defaults>
</compile_context>

<pallas_src>
import jax
import jax.numpy as jnp
from jax import lax
from jax.experimental import pallas as pl
from jax.experimental.pallas import tpu as pltpu

INPUT_DIM = 8
HIDDEN_DIM = 32
NUM_LAYERS = 2
NUM_CLASSES = 4
BATCH = 2
SEQ = 8


# ----------------------------------------------------------------------------
# Fused Pallas kernel: 2-layer bidirectional LSTM + classification head
# ----------------------------------------------------------------------------
def _fused_lstm_kernel(x_ref, w0ih_ref, b0_ref, w0hh_ref,
                       w1ih_ref, b1_ref, w1hh_ref,
                       hw1_ref, hb1_ref, hw2_ref, hb2_ref,
                       out_ref):
    """Entire LSTMBaseline forward pass.

    x_ref   : [B, T, Din]  input as given by the caller (batch-major)
    w{l}ih  : [Din_l, 8H]  bf16 x-projection, fwd gate cols 0:4H, bwd 4H:8H
                           (i/f/o columns pre-scaled by 0.5)
    b{l}    : [1, 8H]      f32 (b_ih + b_hh), same column layout / scaling
    w{l}hh  : [2H, 4H]     bf16 recurrent weights, fwd rows 0:H, bwd rows H:2H
    hw1/hb1 : [2H, H]/[1, H]   head Linear(2H->H), f32
    hw2/hb2 : [H, C]/[1, C]    head Linear(H->C), f32
    out_ref : [B, C]       logits
    Gate order (PyTorch): i, f, g, o.
    """
    f32 = jnp.float32
    bf16 = jnp.bfloat16
    B, T, _ = x_ref.shape
    H = w0hh_ref.shape[0] // 2
    H4 = 4 * H

    # ---- loop-invariant constants (hoisted) ----
    lane4 = lax.broadcasted_iota(jnp.int32, (2 * B, H4), 1)
    is_g = jnp.logical_and(lane4 >= 2 * H, lane4 < 3 * H)      # tanh ('g') lanes
    # act = tanh(gates) * alpha + beta  ==> sigmoid on i/f/o lanes, tanh on g.
    g_alpha = jnp.where(is_g, 1.0, 0.5).astype(f32)
    g_beta = jnp.where(is_g, 0.0, 0.5).astype(f32)
    # Block-diagonal mask for the stacked-direction recurrent matmul operand.
    row2 = lax.broadcasted_iota(jnp.int32, (2 * B, 2 * H), 0)
    col2 = lax.broadcasted_iota(jnp.int32, (2 * B, 2 * H), 1)
    bd_mask = jnp.where((row2 < B) == (col2 < H), 1.0, 0.0).astype(f32)

    def run_layer(slab, whh, collect):
        """One bidirectional layer, both directions stacked on sublanes.

        slab: [T*2B, 4H] f32 precomputed pre-activations (x-proj + bias);
              block t = [fwd rows (b=0..B-1) @ time t ; bwd rows @ time T-1-t].
        whh : [2H, 4H] bf16 block-stacked recurrent weights.
        Returns (final stacked hidden [2B, H], fwd outputs by time, bwd outputs
        by time) — the output lists are only populated when `collect`.
        """
        c = None
        h = None
        h_wide = None
        hf = [None] * T
        hb = [None] * T
        for t in range(T):                                   # fully unrolled
            gx = slab[t * 2 * B:(t + 1) * 2 * B, :]          # [2B, 4H]
            if t == 0:
                gates = gx                                    # h_{-1} = 0
            else:
                gates = gx + jnp.dot(h_wide.astype(bf16), whh,
                                     preferred_element_type=f32)
            th = jnp.tanh(gates)                              # single EUP push
            act = th * g_alpha + g_beta
            i_g = act[:, 0:H]
            f_g = act[:, H:2 * H]
            g_g = act[:, 2 * H:3 * H]
            o_g = act[:, 3 * H:4 * H]
            c = i_g * g_g if t == 0 else f_g * c + i_g * g_g  # c_{-1} = 0
            h = o_g * jnp.tanh(c)                             # [2B, H]
            if t + 1 < T:
                # Block-diagonal re-pack for the next step's single matmul.
                h_wide = bd_mask * jnp.concatenate([h, h], axis=1)
            if collect:
                hf[t] = h[0:B]              # forward output at time t
                hb[T - 1 - t] = h[B:2 * B]  # backward output at time T-1-t
        return h, hf, hb

    # ---- layer 0: input projection hoisted out of the recurrence ----
    xv = x_ref[...]                                           # [B, T, Din]
    gx0 = []
    for b in range(B):
        gx0.append(jnp.dot(xv[b].astype(bf16), w0ih_ref[...],
                           preferred_element_type=f32) + b0_ref[...])  # [T, 8H]
    # Build the per-step slab once (time reorder + bwd reversal, off-chain).
    parts0 = []
    for t in range(T):
        for b in range(B):
            parts0.append(gx0[b][t:t + 1, 0:H4])                       # fwd @ t
        for b in range(B):
            parts0.append(gx0[b][T - 1 - t:T - t, H4:2 * H4])          # bwd @ T-1-t
    slab0 = jnp.concatenate(parts0, axis=0)                   # [T*2B, 4H]

    _, hf0, hb0 = run_layer(slab0, w0hh_ref[...], collect=True)

    # ---- layer 1: input is layer-0 output, built in-register (no scratch) ----
    y0 = jnp.concatenate([jnp.concatenate(hf0, axis=0),
                          jnp.concatenate(hb0, axis=0)], axis=1)       # [T*B, 2H]
    gx1 = (jnp.dot(y0.astype(bf16), w1ih_ref[...],
                   preferred_element_type=f32) + b1_ref[...])          # [T*B, 8H]
    parts1 = []
    for t in range(T):
        parts1.append(gx1[t * B:(t + 1) * B, 0:H4])
        parts1.append(gx1[(T - 1 - t) * B:(T - t) * B, H4:2 * H4])
    slab1 = jnp.concatenate(parts1, axis=0)                   # [T*2B, 4H]

    h_last, _, _ = run_layer(slab1, w1hh_ref[...], collect=False)      # [2B, H]

    # hidden_final = cat(hidden[-2] (fwd final), hidden[-1] (bwd final))
    hidden_final = jnp.concatenate([h_last[0:B], h_last[B:2 * B]], axis=1)

    # ---- classification head: Linear -> ReLU -> (eval dropout) -> Linear ----
    z = jnp.dot(hidden_final, hw1_ref[...], preferred_element_type=f32) + hb1_ref[...]
    z = jnp.maximum(z, 0.0)
    out_ref[...] = (jnp.dot(z, hw2_ref[...], preferred_element_type=f32)
                    + hb2_ref[...])


# ----------------------------------------------------------------------------
# Wrapper
# ----------------------------------------------------------------------------
@jax.jit
def lstm_baseline_forward(x, params):
    """x: [B, T, input_dim] -> (logits [B, num_classes], None)."""
    B, T, Din = x.shape
    C = params["head"]["b2"].shape[1]
    l0, l1 = params["layers"]
    hd = params["head"]
    vmem = pl.BlockSpec(memory_space=pltpu.MemorySpace.VMEM)

    logits = pl.pallas_call(
        _fused_lstm_kernel,
        out_shape=jax.ShapeDtypeStruct((B, C), jnp.float32),
        in_specs=[vmem] * 11,
        out_specs=vmem,
    )(x.astype(jnp.float32),
      l0["wih"], l0["b"], l0["whh"],
      l1["wih"], l1["b"], l1["whh"],
      hd["w1_t"], hd["b1"], hd["w2_t"], hd["b2"])
    return logits, None


# ----------------------------------------------------------------------------
# Deterministic parameter construction (PyTorch-style U(-1/sqrt(H), 1/sqrt(H)))
# Weights are pre-transposed / pre-concatenated / pre-scaled for the kernel:
#  * i/f/o gate columns scaled by 0.5 so sigmoid(z) == 0.5*tanh(z/2)+0.5 in-loop
#  * LSTM weights cast to bf16 (MXU-native); biases & head stay f32
# ----------------------------------------------------------------------------
def make_params(key):
    H = HIDDEN_DIM
    k = 1.0 / jnp.sqrt(jnp.float32(H))
    # Gate-column scaling for the sigmoid-as-tanh trick (gate order i,f,g,o).
    gate_scale = jnp.concatenate([jnp.full((2 * H,), 0.5, jnp.float32),
                                  jnp.ones((H,), jnp.float32),
                                  jnp.full((H,), 0.5, jnp.float32)])   # [4H]
    layers = []
    for layer in range(NUM_LAYERS):
        din = INPUT_DIM if layer == 0 else 2 * H
        wih_t, whh_t, bias = [], [], []
        for _d in range(2):                     # 0=fwd, 1=bwd
            key, k1, k2, k3, k4 = jax.random.split(key, 5)
            wih = jax.random.uniform(k1, (4 * H, din), jnp.float32, -k, k)
            whh = jax.random.uniform(k2, (4 * H, H), jnp.float32, -k, k)
            bih = jax.random.uniform(k3, (4 * H,), jnp.float32, -k, k)
            bhh = jax.random.uniform(k4, (4 * H,), jnp.float32, -k, k)
            wih_t.append(wih.T * gate_scale[None, :])               # [din, 4H]
            whh_t.append(whh.T * gate_scale[None, :])               # [H, 4H]
            bias.append(((bih + bhh) * gate_scale).reshape(1, 4 * H))
        layers.append({
            "wih": jnp.concatenate(wih_t, axis=1).astype(jnp.bfloat16),  # [din, 8H]
            "b":   jnp.concatenate(bias, axis=1),                        # [1, 8H] f32
            "whh": jnp.concatenate(whh_t, axis=0).astype(jnp.bfloat16),  # [2H, 4H]
        })

    key, k1, k2, k3, k4 = jax.random.split(key, 5)
    k_h1 = 1.0 / jnp.sqrt(jnp.float32(2 * H))
    k_h2 = 1.0 / jnp.sqrt(jnp.float32(H))
    head = {
        "w1_t": jax.random.uniform(k1, (H, 2 * H), jnp.float32, -k_h1, k_h1).T,  # [2H, H]
        "b1":   jax.random.uniform(k2, (1, H), jnp.float32, -k_h1, k_h1),
        "w2_t": jax.random.uniform(k3, (NUM_CLASSES, H), jnp.float32, -k_h2, k_h2).T,  # [H, C]
        "b2":   jax.random.uniform(k4, (1, NUM_CLASSES), jnp.float32, -k_h2, k_h2),
    }
    return {"layers": layers, "head": head}


if __name__ == "__main__":
    root = jax.random.PRNGKey(0)
    pkey, xkey = jax.random.split(root)
    params = make_params(pkey)
    x = jax.random.normal(xkey, (BATCH, SEQ, INPUT_DIM), jnp.float32)

    logits, attn = lstm_baseline_forward(x, params)
    logits = jax.block_until_ready(logits)
    assert logits.shape == (BATCH, NUM_CLASSES)
    assert attn is None
    assert bool(jnp.all(jnp.isfinite(logits)))
    print("KERNEL_OK")
</pallas_src>

<mosaic_0001>
module attributes {stable_mosaic.version = 11 : i64} {
  func.func @_fused_lstm_kernel(%arg0: memref<2x8x8xf32, #tpu.memory_space<vmem>>, %arg1: memref<8x256xbf16, #tpu.memory_space<vmem>>, %arg2: memref<1x256xf32, #tpu.memory_space<vmem>>, %arg3: memref<64x128xbf16, #tpu.memory_space<vmem>>, %arg4: memref<64x256xbf16, #tpu.memory_space<vmem>>, %arg5: memref<1x256xf32, #tpu.memory_space<vmem>>, %arg6: memref<64x128xbf16, #tpu.memory_space<vmem>>, %arg7: memref<64x32xf32, #tpu.memory_space<vmem>>, %arg8: memref<1x32xf32, #tpu.memory_space<vmem>>, %arg9: memref<32x4xf32, #tpu.memory_space<vmem>>, %arg10: memref<1x4xf32, #tpu.memory_space<vmem>>, %arg11: memref<2x4xf32, #tpu.memory_space<vmem>>) attributes {dimension_semantics = [], scalar_prefetch = 0 : i64, scratch_operands = 0 : i64, tpu.core_type = #tpu.core_type<tc>} {
    %0 = tpu.iota {dimensions = array<i32: 1>} : vector<4x128xi32>
    %c64_i32 = arith.constant 64 : i32
    %1 = vector.broadcast %c64_i32 : i32 to vector<4x128xi32>
    %2 = arith.cmpi sge, %0, %1 : vector<4x128xi32>
    %c96_i32 = arith.constant 96 : i32
    %3 = vector.broadcast %c96_i32 : i32 to vector<4x128xi32>
    %4 = arith.cmpi slt, %0, %3 : vector<4x128xi32>
    %5 = arith.andi %2, %4 : vector<4x128xi1>
    %cst = arith.constant 1.000000e+00 : f32
    %cst_0 = arith.constant 5.000000e-01 : f32
    %6 = vector.broadcast %cst : f32 to vector<4x128xf32>
    %7 = vector.broadcast %cst_0 : f32 to vector<4x128xf32>
    %8 = arith.select %5, %6, %7 : vector<4x128xi1>, vector<4x128xf32>
    %cst_1 = arith.constant 0.000000e+00 : f32
    %cst_2 = arith.constant 5.000000e-01 : f32
    %9 = vector.broadcast %cst_1 : f32 to vector<4x128xf32>
    %10 = vector.broadcast %cst_2 : f32 to vector<4x128xf32>
    %11 = arith.select %5, %9, %10 : vector<4x128xi1>, vector<4x128xf32>
    %12 = tpu.iota {dimensions = array<i32: 0>} : vector<4x64xi32>
    %13 = tpu.iota {dimensions = array<i32: 1>} : vector<4x64xi32>
    %c2_i32 = arith.constant 2 : i32
    %14 = vector.broadcast %c2_i32 : i32 to vector<4x64xi32>
    %15 = arith.cmpi slt, %12, %14 : vector<4x64xi32>
    %c32_i32 = arith.constant 32 : i32
    %16 = vector.broadcast %c32_i32 : i32 to vector<4x64xi32>
    %17 = arith.cmpi slt, %13, %16 : vector<4x64xi32>
    %18 = arith.xori %15, %17 : vector<4x64xi1>
    %cst_3 = arith.constant dense<true> : vector<4x64xi1>
    %19 = arith.xori %18, %cst_3 : vector<4x64xi1>
    %cst_4 = arith.constant 1.000000e+00 : f32
    %cst_5 = arith.constant 0.000000e+00 : f32
    %20 = vector.broadcast %cst_4 : f32 to vector<4x64xf32>
    %21 = vector.broadcast %cst_5 : f32 to vector<4x64xf32>
    %22 = arith.select %19, %20, %21 : vector<4x64xi1>, vector<4x64xf32>
    %c0 = arith.constant 0 : index
    %c0_6 = arith.constant 0 : index
    %c0_7 = arith.constant 0 : index
    %23 = vector.load %arg0[%c0, %c0_6, %c0_7] : memref<2x8x8xf32, #tpu.memory_space<vmem>>, vector<2x8x8xf32>
    %24 = vector.extract_strided_slice %23 {offsets = [0, 0, 0], sizes = [1, 8, 8], strides = [1, 1, 1]} : vector<2x8x8xf32> to vector<1x8x8xf32>
    %25 = vector.shape_cast %24 : vector<1x8x8xf32> to vector<8x8xf32>
    %26 = arith.truncf %25 : vector<8x8xf32> to vector<8x8xbf16>
    %c0_8 = arith.constant 0 : index
    %c0_9 = arith.constant 0 : index
    %27 = vector.load %arg1[%c0_8, %c0_9] : memref<8x256xbf16, #tpu.memory_space<vmem>>, vector<8x256xbf16>
    %cst_10 = arith.constant dense<0.000000e+00> : vector<8x256xf32>
    %28 = tpu.matmul %26, %27, %cst_10 {dimension_numbers = #tpu.dot_dimension_numbers<[1], [0], [0], [1], [0, 0, 1, 1], [], []>} : vector<8x8xbf16>, vector<8x256xbf16>, vector<8x256xf32> -> vector<8x256xf32>
    %c0_11 = arith.constant 0 : index
    %c0_12 = arith.constant 0 : index
    %29 = vector.load %arg2[%c0_11, %c0_12] : memref<1x256xf32, #tpu.memory_space<vmem>>, vector<1x256xf32>
    %30 = vector.broadcast %29 : vector<1x256xf32> to vector<8x256xf32>
    %31 = arith.addf %28, %30 : vector<8x256xf32>
    %32 = vector.extract_strided_slice %23 {offsets = [1, 0, 0], sizes = [1, 8, 8], strides = [1, 1, 1]} : vector<2x8x8xf32> to vector<1x8x8xf32>
    %33 = vector.shape_cast %32 : vector<1x8x8xf32> to vector<8x8xf32>
    %34 = arith.truncf %33 : vector<8x8xf32> to vector<8x8xbf16>
    %c0_13 = arith.constant 0 : index
    %c0_14 = arith.constant 0 : index
    %35 = vector.load %arg1[%c0_13, %c0_14] : memref<8x256xbf16, #tpu.memory_space<vmem>>, vector<8x256xbf16>
    %cst_15 = arith.constant dense<0.000000e+00> : vector<8x256xf32>
    %36 = tpu.matmul %34, %35, %cst_15 {dimension_numbers = #tpu.dot_dimension_numbers<[1], [0], [0], [1], [0, 0, 1, 1], [], []>} : vector<8x8xbf16>, vector<8x256xbf16>, vector<8x256xf32> -> vector<8x256xf32>
    %c0_16 = arith.constant 0 : index
    %c0_17 = arith.constant 0 : index
    %37 = vector.load %arg2[%c0_16, %c0_17] : memref<1x256xf32, #tpu.memory_space<vmem>>, vector<1x256xf32>
    %38 = vector.broadcast %37 : vector<1x256xf32> to vector<8x256xf32>
    %39 = arith.addf %36, %38 : vector<8x256xf32>
    %40 = vector.extract_strided_slice %31 {offsets = [0, 0], sizes = [1, 128], strides = [1, 1]} : vector<8x256xf32> to vector<1x128xf32>
    %41 = vector.extract_strided_slice %39 {offsets = [0, 0], sizes = [1, 128], strides = [1, 1]} : vector<8x256xf32> to vector<1x128xf32>
    %42 = vector.extract_strided_slice %31 {offsets = [7, 128], sizes = [1, 128], strides = [1, 1]} : vector<8x256xf32> to vector<1x128xf32>
    %43 = vector.extract_strided_slice %39 {offsets = [7, 128], sizes = [1, 128], strides = [1, 1]} : vector<8x256xf32> to vector<1x128xf32>
    %44 = vector.extract_strided_slice %31 {offsets = [1, 0], sizes = [1, 128], strides = [1, 1]} : vector<8x256xf32> to vector<1x128xf32>
    %45 = vector.extract_strided_slice %39 {offsets = [1, 0], sizes = [1, 128], strides = [1, 1]} : vector<8x256xf32> to vector<1x128xf32>
    %46 = vector.extract_strided_slice %31 {offsets = [6, 128], sizes = [1, 128], strides = [1, 1]} : vector<8x256xf32> to vector<1x128xf32>
    %47 = vector.extract_strided_slice %39 {offsets = [6, 128], sizes = [1, 128], strides = [1, 1]} : vector<8x256xf32> to vector<1x128xf32>
    %48 = vector.extract_strided_slice %31 {offsets = [2, 0], sizes = [1, 128], strides = [1, 1]} : vector<8x256xf32> to vector<1x128xf32>
    %49 = vector.extract_strided_slice %39 {offsets = [2, 0], sizes = [1, 128], strides = [1, 1]} : vector<8x256xf32> to vector<1x128xf32>
    %50 = vector.extract_strided_slice %31 {offsets = [5, 128], sizes = [1, 128], strides = [1, 1]} : vector<8x256xf32> to vector<1x128xf32>
    %51 = vector.extract_strided_slice %39 {offsets = [5, 128], sizes = [1, 128], strides = [1, 1]} : vector<8x256xf32> to vector<1x128xf32>
    %52 = vector.extract_strided_slice %31 {offsets = [3, 0], sizes = [1, 128], strides = [1, 1]} : vector<8x256xf32> to vector<1x128xf32>
    %53 = vector.extract_strided_slice %39 {offsets = [3, 0], sizes = [1, 128], strides = [1, 1]} : vector<8x256xf32> to vector<1x128xf32>
    %54 = vector.extract_strided_slice %31 {offsets = [4, 128], sizes = [1, 128], strides = [1, 1]} : vector<8x256xf32> to vector<1x128xf32>
    %55 = vector.extract_strided_slice %39 {offsets = [4, 128], sizes = [1, 128], strides = [1, 1]} : vector<8x256xf32> to vector<1x128xf32>
    %56 = vector.extract_strided_slice %31 {offsets = [4, 0], sizes = [1, 128], strides = [1, 1]} : vector<8x256xf32> to vector<1x128xf32>
    %57 = vector.extract_strided_slice %39 {offsets = [4, 0], sizes = [1, 128], strides = [1, 1]} : vector<8x256xf32> to vector<1x128xf32>
    %58 = vector.extract_strided_slice %31 {offsets = [3, 128], sizes = [1, 128], strides = [1, 1]} : vector<8x256xf32> to vector<1x128xf32>
    %59 = vector.extract_strided_slice %39 {offsets = [3, 128], sizes = [1, 128], strides = [1, 1]} : vector<8x256xf32> to vector<1x128xf32>
    %60 = vector.extract_strided_slice %31 {offsets = [5, 0], sizes = [1, 128], strides = [1, 1]} : vector<8x256xf32> to vector<1x128xf32>
    %61 = vector.extract_strided_slice %39 {offsets = [5, 0], sizes = [1, 128], strides = [1, 1]} : vector<8x256xf32> to vector<1x128xf32>
    %62 = vector.extract_strided_slice %31 {offsets = [2, 128], sizes = [1, 128], strides = [1, 1]} : vector<8x256xf32> to vector<1x128xf32>
    %63 = vector.extract_strided_slice %39 {offsets = [2, 128], sizes = [1, 128], strides = [1, 1]} : vector<8x256xf32> to vector<1x128xf32>
    %64 = vector.extract_strided_slice %31 {offsets = [6, 0], sizes = [1, 128], strides = [1, 1]} : vector<8x256xf32> to vector<1x128xf32>
    %65 = vector.extract_strided_slice %39 {offsets = [6, 0], sizes = [1, 128], strides = [1, 1]} : vector<8x256xf32> to vector<1x128xf32>
    %66 = vector.extract_strided_slice %31 {offsets = [1, 128], sizes = [1, 128], strides = [1, 1]} : vector<8x256xf32> to vector<1x128xf32>
    %67 = vector.extract_strided_slice %39 {offsets = [1, 128], sizes = [1, 128], strides = [1, 1]} : vector<8x256xf32> to vector<1x128xf32>
    %68 = vector.extract_strided_slice %31 {offsets = [7, 0], sizes = [1, 128], strides = [1, 1]} : vector<8x256xf32> to vector<1x128xf32>
    %69 = vector.extract_strided_slice %39 {offsets = [7, 0], sizes = [1, 128], strides = [1, 1]} : vector<8x256xf32> to vector<1x128xf32>
    %70 = vector.extract_strided_slice %31 {offsets = [0, 128], sizes = [1, 128], strides = [1, 1]} : vector<8x256xf32> to vector<1x128xf32>
    %71 = vector.extract_strided_slice %39 {offsets = [0, 128], sizes = [1, 128], strides = [1, 1]} : vector<8x256xf32> to vector<1x128xf32>
    %72 = tpu.concatenate %40, %41, %42, %43, %44, %45, %46, %47, %48, %49, %50, %51, %52, %53, %54, %55 in 0 : vector<1x128xf32>, vector<1x128xf32>, vector<1x128xf32>, vector<1x128xf32>, vector<1x128xf32>, vector<1x128xf32>, vector<1x128xf32>, vector<1x128xf32>, vector<1x128xf32>, vector<1x128xf32>, vector<1x128xf32>, vector<1x128xf32>, vector<1x128xf32>, vector<1x128xf32>, vector<1x128xf32>, vector<1x128xf32> -> vector<16x128xf32>
    %73 = tpu.concatenate %56, %57, %58, %59, %60, %61, %62, %63, %64, %65, %66, %67, %68, %69, %70, %71 in 0 : vector<1x128xf32>, vector<1x128xf32>, vector<1x128xf32>, vector<1x128xf32>, vector<1x128xf32>, vector<1x128xf32>, vector<1x128xf32>, vector<1x128xf32>, vector<1x128xf32>, vector<1x128xf32>, vector<1x128xf32>, vector<1x128xf32>, vector<1x128xf32>, vector<1x128xf32>, vector<1x128xf32>, vector<1x128xf32> -> vector<16x128xf32>
    %74 = tpu.concatenate %72, %73 in 0 : vector<16x128xf32>, vector<16x128xf32> -> vector<32x128xf32>
    %c0_18 = arith.constant 0 : index
    %c0_19 = arith.constant 0 : index
    %75 = vector.load %arg3[%c0_18, %c0_19] : memref<64x128xbf16, #tpu.memory_space<vmem>>, vector<64x128xbf16>
    %76 = vector.extract_strided_slice %74 {offsets = [0, 0], sizes = [4, 128], strides = [1, 1]} : vector<32x128xf32> to vector<4x128xf32>
    %77 = math.tanh %76 : vector<4x128xf32>
    %78 = arith.mulf %77, %8 : vector<4x128xf32>
    %79 = arith.addf %78, %11 : vector<4x128xf32>
    %80 = vector.extract_strided_slice %79 {offsets = [0, 0], sizes = [4, 32], strides = [1, 1]} : vector<4x128xf32> to vector<4x32xf32>
    %81 = vector.extract_strided_slice %79 {offsets = [0, 64], sizes = [4, 32], strides = [1, 1]} : vector<4x128xf32> to vector<4x32xf32>
    %82 = vector.extract_strided_slice %79 {offsets = [0, 96], sizes = [4, 32], strides = [1, 1]} : vector<4x128xf32> to vector<4x32xf32>
    %83 = arith.mulf %80, %81 : vector<4x32xf32>
    %84 = math.tanh %83 : vector<4x32xf32>
    %85 = arith.mulf %82, %84 : vector<4x32xf32>
    %86 = tpu.concatenate %85, %85 in 1 : vector<4x32xf32>, vector<4x32xf32> -> vector<4x64xf32>
    %87 = arith.mulf %22, %86 : vector<4x64xf32>
    %88 = vector.extract_strided_slice %85 {offsets = [0, 0], sizes = [2, 32], strides = [1, 1]} : vector<4x32xf32> to vector<2x32xf32>
    %89 = vector.extract_strided_slice %85 {offsets = [2, 0], sizes = [2, 32], strides = [1, 1]} : vector<4x32xf32> to vector<2x32xf32>
    %90 = vector.extract_strided_slice %74 {offsets = [4, 0], sizes = [4, 128], strides = [1, 1]} : vector<32x128xf32> to vector<4x128xf32>
    %91 = arith.truncf %87 : vector<4x64xf32> to vector<4x64xbf16>
    %cst_20 = arith.constant dense<0.000000e+00> : vector<4x128xf32>
    %92 = tpu.matmul %91, %75, %cst_20 {dimension_numbers = #tpu.dot_dimension_numbers<[1], [0], [0], [1], [0, 0, 1, 1], [], []>} : vector<4x64xbf16>, vector<64x128xbf16>, vector<4x128xf32> -> vector<4x128xf32>
    %93 = arith.addf %90, %92 : vector<4x128xf32>
    %94 = math.tanh %93 : vector<4x128xf32>
    %95 = arith.mulf %94, %8 : vector<4x128xf32>
    %96 = arith.addf %95, %11 : vector<4x128xf32>
    %97 = vector.extract_strided_slice %96 {offsets = [0, 0], sizes = [4, 32], strides = [1, 1]} : vector<4x128xf32> to vector<4x32xf32>
    %98 = vector.extract_strided_slice %96 {offsets = [0, 32], sizes = [4, 32], strides = [1, 1]} : vector<4x128xf32> to vector<4x32xf32>
    %99 = vector.extract_strided_slice %96 {offsets = [0, 64], sizes = [4, 32], strides = [1, 1]} : vector<4x128xf32> to vector<4x32xf32>
    %100 = vector.extract_strided_slice %96 {offsets = [0, 96], sizes = [4, 32], strides = [1, 1]} : vector<4x128xf32> to vector<4x32xf32>
    %101 = arith.mulf %98, %83 : vector<4x32xf32>
    %102 = arith.mulf %97, %99 : vector<4x32xf32>
    %103 = arith.addf %101, %102 : vector<4x32xf32>
    %104 = math.tanh %103 : vector<4x32xf32>
    %105 = arith.mulf %100, %104 : vector<4x32xf32>
    %106 = tpu.concatenate %105, %105 in 1 : vector<4x32xf32>, vector<4x32xf32> -> vector<4x64xf32>
    %107 = arith.mulf %22, %106 : vector<4x64xf32>
    %108 = vector.extract_strided_slice %105 {offsets = [0, 0], sizes = [2, 32], strides = [1, 1]} : vector<4x32xf32> to vector<2x32xf32>
    %109 = vector.extract_strided_slice %105 {offsets = [2, 0], sizes = [2, 32], strides = [1, 1]} : vector<4x32xf32> to vector<2x32xf32>
    %110 = vector.extract_strided_slice %74 {offsets = [8, 0], sizes = [4, 128], strides = [1, 1]} : vector<32x128xf32> to vector<4x128xf32>
    %111 = arith.truncf %107 : vector<4x64xf32> to vector<4x64xbf16>
    %cst_21 = arith.constant dense<0.000000e+00> : vector<4x128xf32>
    %112 = tpu.matmul %111, %75, %cst_21 {dimension_numbers = #tpu.dot_dimension_numbers<[1], [0], [0], [1], [0, 0, 1, 1], [], []>} : vector<4x64xbf16>, vector<64x128xbf16>, vector<4x128xf32> -> vector<4x128xf32>
    %113 = arith.addf %110, %112 : vector<4x128xf32>
    %114 = math.tanh %113 : vector<4x128xf32>
    %115 = arith.mulf %114, %8 : vector<4x128xf32>
    %116 = arith.addf %115, %11 : vector<4x128xf32>
    %117 = vector.extract_strided_slice %116 {offsets = [0, 0], sizes = [4, 32], strides = [1, 1]} : vector<4x128xf32> to vector<4x32xf32>
    %118 = vector.extract_strided_slice %116 {offsets = [0, 32], sizes = [4, 32], strides = [1, 1]} : vector<4x128xf32> to vector<4x32xf32>
    %119 = vector.extract_strided_slice %116 {offsets = [0, 64], sizes = [4, 32], strides = [1, 1]} : vector<4x128xf32> to vector<4x32xf32>
    %120 = vector.extract_strided_slice %116 {offsets = [0, 96], sizes = [4, 32], strides = [1, 1]} : vector<4x128xf32> to vector<4x32xf32>
    %121 = arith.mulf %118, %103 : vector<4x32xf32>
    %122 = arith.mulf %117, %119 : vector<4x32xf32>
    %123 = arith.addf %121, %122 : vector<4x32xf32>
    %124 = math.tanh %123 : vector<4x32xf32>
    %125 = arith.mulf %120, %124 : vector<4x32xf32>
    %126 = tpu.concatenate %125, %125 in 1 : vector<4x32xf32>, vector<4x32xf32> -> vector<4x64xf32>
    %127 = arith.mulf %22, %126 : vector<4x64xf32>
    %128 = vector.extract_strided_slice %125 {offsets = [0, 0], sizes = [2, 32], strides = [1, 1]} : vector<4x32xf32> to vector<2x32xf32>
    %129 = vector.extract_strided_slice %125 {offsets = [2, 0], sizes = [2, 32], strides = [1, 1]} : vector<4x32xf32> to vector<2x32xf32>
    %130 = vector.extract_strided_slice %74 {offsets = [12, 0], sizes = [4, 128], strides = [1, 1]} : vector<32x128xf32> to vector<4x128xf32>
    %131 = arith.truncf %127 : vector<4x64xf32> to vector<4x64xbf16>
    %cst_22 = arith.constant dense<0.000000e+00> : vector<4x128xf32>
    %132 = tpu.matmul %131, %75, %cst_22 {dimension_numbers = #tpu.dot_dimension_numbers<[1], [0], [0], [1], [0, 0, 1, 1], [], []>} : vector<4x64xbf16>, vector<64x128xbf16>, vector<4x128xf32> -> vector<4x128xf32>
    %133 = arith.addf %130, %132 : vector<4x128xf32>
    %134 = math.tanh %133 : vector<4x128xf32>
    %135 = arith.mulf %134, %8 : vector<4x128xf32>
    %136 = arith.addf %135, %11 : vector<4x128xf32>
    %137 = vector.extract_strided_slice %136 {offsets = [0, 0], sizes = [4, 32], strides = [1, 1]} : vector<4x128xf32> to vector<4x32xf32>
    %138 = vector.extract_strided_slice %136 {offsets = [0, 32], sizes = [4, 32], strides = [1, 1]} : vector<4x128xf32> to vector<4x32xf32>
    %139 = vector.extract_strided_slice %136 {offsets = [0, 64], sizes = [4, 32], strides = [1, 1]} : vector<4x128xf32> to vector<4x32xf32>
    %140 = vector.extract_strided_slice %136 {offsets = [0, 96], sizes = [4, 32], strides = [1, 1]} : vector<4x128xf32> to vector<4x32xf32>
    %141 = arith.mulf %138, %123 : vector<4x32xf32>
    %142 = arith.mulf %137, %139 : vector<4x32xf32>
    %143 = arith.addf %141, %142 : vector<4x32xf32>
    %144 = math.tanh %143 : vector<4x32xf32>
    %145 = arith.mulf %140, %144 : vector<4x32xf32>
    %146 = tpu.concatenate %145, %145 in 1 : vector<4x32xf32>, vector<4x32xf32> -> vector<4x64xf32>
    %147 = arith.mulf %22, %146 : vector<4x64xf32>
    %148 = vector.extract_strided_slice %145 {offsets = [0, 0], sizes = [2, 32], strides = [1, 1]} : vector<4x32xf32> to vector<2x32xf32>
    %149 = vector.extract_strided_slice %145 {offsets = [2, 0], sizes = [2, 32], strides = [1, 1]} : vector<4x32xf32> to vector<2x32xf32>
    %150 = vector.extract_strided_slice %74 {offsets = [16, 0], sizes = [4, 128], strides = [1, 1]} : vector<32x128xf32> to vector<4x128xf32>
    %151 = arith.truncf %147 : vector<4x64xf32> to vector<4x64xbf16>
    %cst_23 = arith.constant dense<0.000000e+00> : vector<4x128xf32>
    %152 = tpu.matmul %151, %75, %cst_23 {dimension_numbers = #tpu.dot_dimension_numbers<[1], [0], [0], [1], [0, 0, 1, 1], [], []>} : vector<4x64xbf16>, vector<64x128xbf16>, vector<4x128xf32> -> vector<4x128xf32>
    %153 = arith.addf %150, %152 : vector<4x128xf32>
    %154 = math.tanh %153 : vector<4x128xf32>
    %155 = arith.mulf %154, %8 : vector<4x128xf32>
    %156 = arith.addf %155, %11 : vector<4x128xf32>
    %157 = vector.extract_strided_slice %156 {offsets = [0, 0], sizes = [4, 32], strides = [1, 1]} : vector<4x128xf32> to vector<4x32xf32>
    %158 = vector.extract_strided_slice %156 {offsets = [0, 32], sizes = [4, 32], strides = [1, 1]} : vector<4x128xf32> to vector<4x32xf32>
    %159 = vector.extract_strided_slice %156 {offsets = [0, 64], sizes = [4, 32], strides = [1, 1]} : vector<4x128xf32> to vector<4x32xf32>
    %160 = vector.extract_strided_slice %156 {offsets = [0, 96], sizes = [4, 32], strides = [1, 1]} : vector<4x128xf32> to vector<4x32xf32>
    %161 = arith.mulf %158, %143 : vector<4x32xf32>
    %162 = arith.mulf %157, %159 : vector<4x32xf32>
    %163 = arith.addf %161, %162 : vector<4x32xf32>
    %164 = math.tanh %163 : vector<4x32xf32>
    %165 = arith.mulf %160, %164 : vector<4x32xf32>
    %166 = tpu.concatenate %165, %165 in 1 : vector<4x32xf32>, vector<4x32xf32> -> vector<4x64xf32>
    %167 = arith.mulf %22, %166 : vector<4x64xf32>
    %168 = vector.extract_strided_slice %165 {offsets = [0, 0], sizes = [2, 32], strides = [1, 1]} : vector<4x32xf32> to vector<2x32xf32>
    %169 = vector.extract_strided_slice %165 {offsets = [2, 0], sizes = [2, 32], strides = [1, 1]} : vector<4x32xf32> to vector<2x32xf32>
    %170 = vector.extract_strided_slice %74 {offsets = [20, 0], sizes = [4, 128], strides = [1, 1]} : vector<32x128xf32> to vector<4x128xf32>
    %171 = arith.truncf %167 : vector<4x64xf32> to vector<4x64xbf16>
    %cst_24 = arith.constant dense<0.000000e+00> : vector<4x128xf32>
    %172 = tpu.matmul %171, %75, %cst_24 {dimension_numbers = #tpu.dot_dimension_numbers<[1], [0], [0], [1], [0, 0, 1, 1], [], []>} : vector<4x64xbf16>, vector<64x128xbf16>, vector<4x128xf32> -> vector<4x128xf32>
    %173 = arith.addf %170, %172 : vector<4x128xf32>
    %174 = math.tanh %173 : vector<4x128xf32>
    %175 = arith.mulf %174, %8 : vector<4x128xf32>
    %176 = arith.addf %175, %11 : vector<4x128xf32>
    %177 = vector.extract_strided_slice %176 {offsets = [0, 0], sizes = [4, 32], strides = [1, 1]} : vector<4x128xf32> to vector<4x32xf32>
    %178 = vector.extract_strided_slice %176 {offsets = [0, 32], sizes = [4, 32], strides = [1, 1]} : vector<4x128xf32> to vector<4x32xf32>
    %179 = vector.extract_strided_slice %176 {offsets = [0, 64], sizes = [4, 32], strides = [1, 1]} : vector<4x128xf32> to vector<4x32xf32>
    %180 = vector.extract_strided_slice %176 {offsets = [0, 96], sizes = [4, 32], strides = [1, 1]} : vector<4x128xf32> to vector<4x32xf32>
    %181 = arith.mulf %178, %163 : vector<4x32xf32>
    %182 = arith.mulf %177, %179 : vector<4x32xf32>
    %183 = arith.addf %181, %182 : vector<4x32xf32>
    %184 = math.tanh %183 : vector<4x32xf32>
    %185 = arith.mulf %180, %184 : vector<4x32xf32>
    %186 = tpu.concatenate %185, %185 in 1 : vector<4x32xf32>, vector<4x32xf32> -> vector<4x64xf32>
    %187 = arith.mulf %22, %186 : vector<4x64xf32>
    %188 = vector.extract_strided_slice %185 {offsets = [0, 0], sizes = [2, 32], strides = [1, 1]} : vector<4x32xf32> to vector<2x32xf32>
    %189 = vector.extract_strided_slice %185 {offsets = [2, 0], sizes = [2, 32], strides = [1, 1]} : vector<4x32xf32> to vector<2x32xf32>
    %190 = vector.extract_strided_slice %74 {offsets = [24, 0], sizes = [4, 128], strides = [1, 1]} : vector<32x128xf32> to vector<4x128xf32>
    %191 = arith.truncf %187 : vector<4x64xf32> to vector<4x64xbf16>
    %cst_25 = arith.constant dense<0.000000e+00> : vector<4x128xf32>
    %192 = tpu.matmul %191, %75, %cst_25 {dimension_numbers = #tpu.dot_dimension_numbers<[1], [0], [0], [1], [0, 0, 1, 1], [], []>} : vector<4x64xbf16>, vector<64x128xbf16>, vector<4x128xf32> -> vector<4x128xf32>
    %193 = arith.addf %190, %192 : vector<4x128xf32>
    %194 = math.tanh %193 : vector<4x128xf32>
    %195 = arith.mulf %194, %8 : vector<4x128xf32>
    %196 = arith.addf %195, %11 : vector<4x128xf32>
    %197 = vector.extract_strided_slice %196 {offsets = [0, 0], sizes = [4, 32], strides = [1, 1]} : vector<4x128xf32> to vector<4x32xf32>
    %198 = vector.extract_strided_slice %196 {offsets = [0, 32], sizes = [4, 32], strides = [1, 1]} : vector<4x128xf32> to vector<4x32xf32>
    %199 = vector.extract_strided_slice %196 {offsets = [0, 64], sizes = [4, 32], strides = [1, 1]} : vector<4x128xf32> to vector<4x32xf32>
    %200 = vector.extract_strided_slice %196 {offsets = [0, 96], sizes = [4, 32], strides = [1, 1]} : vector<4x128xf32> to vector<4x32xf32>
    %201 = arith.mulf %198, %183 : vector<4x32xf32>
    %202 = arith.mulf %197, %199 : vector<4x32xf32>
    %203 = arith.addf %201, %202 : vector<4x32xf32>
    %204 = math.tanh %203 : vector<4x32xf32>
    %205 = arith.mulf %200, %204 : vector<4x32xf32>
    %206 = tpu.concatenate %205, %205 in 1 : vector<4x32xf32>, vector<4x32xf32> -> vector<4x64xf32>
    %207 = arith.mulf %22, %206 : vector<4x64xf32>
    %208 = vector.extract_strided_slice %205 {offsets = [0, 0], sizes = [2, 32], strides = [1, 1]} : vector<4x32xf32> to vector<2x32xf32>
    %209 = vector.extract_strided_slice %205 {offsets = [2, 0], sizes = [2, 32], strides = [1, 1]} : vector<4x32xf32> to vector<2x32xf32>
    %210 = vector.extract_strided_slice %74 {offsets = [28, 0], sizes = [4, 128], strides = [1, 1]} : vector<32x128xf32> to vector<4x128xf32>
    %211 = arith.truncf %207 : vector<4x64xf32> to vector<4x64xbf16>
    %cst_26 = arith.constant dense<0.000000e+00> : vector<4x128xf32>
    %212 = tpu.matmul %211, %75, %cst_26 {dimension_numbers = #tpu.dot_dimension_numbers<[1], [0], [0], [1], [0, 0, 1, 1], [], []>} : vector<4x64xbf16>, vector<64x128xbf16>, vector<4x128xf32> -> vector<4x128xf32>
    %213 = arith.addf %210, %212 : vector<4x128xf32>
    %214 = math.tanh %213 : vector<4x128xf32>
    %215 = arith.mulf %214, %8 : vector<4x128xf32>
    %216 = arith.addf %215, %11 : vector<4x128xf32>
    %217 = vector.extract_strided_slice %216 {offsets = [0, 0], sizes = [4, 32], strides = [1, 1]} : vector<4x128xf32> to vector<4x32xf32>
    %218 = vector.extract_strided_slice %216 {offsets = [0, 32], sizes = [4, 32], strides = [1, 1]} : vector<4x128xf32> to vector<4x32xf32>
    %219 = vector.extract_strided_slice %216 {offsets = [0, 64], sizes = [4, 32], strides = [1, 1]} : vector<4x128xf32> to vector<4x32xf32>
    %220 = vector.extract_strided_slice %216 {offsets = [0, 96], sizes = [4, 32], strides = [1, 1]} : vector<4x128xf32> to vector<4x32xf32>
    %221 = arith.mulf %218, %203 : vector<4x32xf32>
    %222 = arith.mulf %217, %219 : vector<4x32xf32>
    %223 = arith.addf %221, %222 : vector<4x32xf32>
    %224 = math.tanh %223 : vector<4x32xf32>
    %225 = arith.mulf %220, %224 : vector<4x32xf32>
    %226 = vector.extract_strided_slice %225 {offsets = [0, 0], sizes = [2, 32], strides = [1, 1]} : vector<4x32xf32> to vector<2x32xf32>
    %227 = vector.extract_strided_slice %225 {offsets = [2, 0], sizes = [2, 32], strides = [1, 1]} : vector<4x32xf32> to vector<2x32xf32>
    %228 = tpu.concatenate %88, %108, %128, %148, %168, %188, %208, %226 in 0 : vector<2x32xf32>, vector<2x32xf32>, vector<2x32xf32>, vector<2x32xf32>, vector<2x32xf32>, vector<2x32xf32>, vector<2x32xf32>, vector<2x32xf32> -> vector<16x32xf32>
    %229 = tpu.concatenate %227, %209, %189, %169, %149, %129, %109, %89 in 0 : vector<2x32xf32>, vector<2x32xf32>, vector<2x32xf32>, vector<2x32xf32>, vector<2x32xf32>, vector<2x32xf32>, vector<2x32xf32>, vector<2x32xf32> -> vector<16x32xf32>
    %230 = tpu.concatenate %228, %229 in 1 : vector<16x32xf32>, vector<16x32xf32> -> vector<16x64xf32>
    %231 = arith.truncf %230 : vector<16x64xf32> to vector<16x64xbf16>
    %c0_27 = arith.constant 0 : index
    %c0_28 = arith.constant 0 : index
    %232 = vector.load %arg4[%c0_27, %c0_28] : memref<64x256xbf16, #tpu.memory_space<vmem>>, vector<64x256xbf16>
    %cst_29 = arith.constant dense<0.000000e+00> : vector<16x256xf32>
    %233 = tpu.matmul %231, %232, %cst_29 {dimension_numbers = #tpu.dot_dimension_numbers<[1], [0], [0], [1], [0, 0, 1, 1], [], []>} : vector<16x64xbf16>, vector<64x256xbf16>, vector<16x256xf32> -> vector<16x256xf32>
    %c0_30 = arith.constant 0 : index
    %c0_31 = arith.constant 0 : index
    %234 = vector.load %arg5[%c0_30, %c0_31] : memref<1x256xf32, #tpu.memory_space<vmem>>, vector<1x256xf32>
    %235 = vector.broadcast %234 : vector<1x256xf32> to vector<16x256xf32>
    %236 = arith.addf %233, %235 : vector<16x256xf32>
    %237 = vector.extract_strided_slice %236 {offsets = [0, 0], sizes = [2, 128], strides = [1, 1]} : vector<16x256xf32> to vector<2x128xf32>
    %238 = vector.extract_strided_slice %236 {offsets = [14, 128], sizes = [2, 128], strides = [1, 1]} : vector<16x256xf32> to vector<2x128xf32>
    %239 = vector.extract_strided_slice %236 {offsets = [2, 0], sizes = [2, 128], strides = [1, 1]} : vector<16x256xf32> to vector<2x128xf32>
    %240 = vector.extract_strided_slice %236 {offsets = [12, 128], sizes = [2, 128], strides = [1, 1]} : vector<16x256xf32> to vector<2x128xf32>
    %241 = vector.extract_strided_slice %236 {offsets = [4, 0], sizes = [2, 128], strides = [1, 1]} : vector<16x256xf32> to vector<2x128xf32>
    %242 = vector.extract_strided_slice %236 {offsets = [10, 128], sizes = [2, 128], strides = [1, 1]} : vector<16x256xf32> to vector<2x128xf32>
    %243 = vector.extract_strided_slice %236 {offsets = [6, 0], sizes = [2, 128], strides = [1, 1]} : vector<16x256xf32> to vector<2x128xf32>
    %244 = vector.extract_strided_slice %236 {offsets = [8, 128], sizes = [2, 128], strides = [1, 1]} : vector<16x256xf32> to vector<2x128xf32>
    %245 = vector.extract_strided_slice %236 {offsets = [8, 0], sizes = [2, 128], strides = [1, 1]} : vector<16x256xf32> to vector<2x128xf32>
    %246 = vector.extract_strided_slice %236 {offsets = [6, 128], sizes = [2, 128], strides = [1, 1]} : vector<16x256xf32> to vector<2x128xf32>
    %247 = vector.extract_strided_slice %236 {offsets = [10, 0], sizes = [2, 128], strides = [1, 1]} : vector<16x256xf32> to vector<2x128xf32>
    %248 = vector.extract_strided_slice %236 {offsets = [4, 128], sizes = [2, 128], strides = [1, 1]} : vector<16x256xf32> to vector<2x128xf32>
    %249 = vector.extract_strided_slice %236 {offsets = [12, 0], sizes = [2, 128], strides = [1, 1]} : vector<16x256xf32> to vector<2x128xf32>
    %250 = vector.extract_strided_slice %236 {offsets = [2, 128], sizes = [2, 128], strides = [1, 1]} : vector<16x256xf32> to vector<2x128xf32>
    %251 = vector.extract_strided_slice %236 {offsets = [14, 0], sizes = [2, 128], strides = [1, 1]} : vector<16x256xf32> to vector<2x128xf32>
    %252 = vector.extract_strided_slice %236 {offsets = [0, 128], sizes = [2, 128], strides = [1, 1]} : vector<16x256xf32> to vector<2x128xf32>
    %253 = tpu.concatenate %237, %238, %239, %240, %241, %242, %243, %244, %245, %246, %247, %248, %249, %250, %251, %252 in 0 : vector<2x128xf32>, vector<2x128xf32>, vector<2x128xf32>, vector<2x128xf32>, vector<2x128xf32>, vector<2x128xf32>, vector<2x128xf32>, vector<2x128xf32>, vector<2x128xf32>, vector<2x128xf32>, vector<2x128xf32>, vector<2x128xf32>, vector<2x128xf32>, vector<2x128xf32>, vector<2x128xf32>, vector<2x128xf32> -> vector<32x128xf32>
    %c0_32 = arith.constant 0 : index
    %c0_33 = arith.constant 0 : index
    %254 = vector.load %arg6[%c0_32, %c0_33] : memref<64x128xbf16, #tpu.memory_space<vmem>>, vector<64x128xbf16>
    %255 = vector.extract_strided_slice %253 {offsets = [0, 0], sizes = [4, 128], strides = [1, 1]} : vector<32x128xf32> to vector<4x128xf32>
    %256 = math.tanh %255 : vector<4x128xf32>
    %257 = arith.mulf %256, %8 : vector<4x128xf32>
    %258 = arith.addf %257, %11 : vector<4x128xf32>
    %259 = vector.extract_strided_slice %258 {offsets = [0, 0], sizes = [4, 32], strides = [1, 1]} : vector<4x128xf32> to vector<4x32xf32>
    %260 = vector.extract_strided_slice %258 {offsets = [0, 64], sizes = [4, 32], strides = [1, 1]} : vector<4x128xf32> to vector<4x32xf32>
    %261 = vector.extract_strided_slice %258 {offsets = [0, 96], sizes = [4, 32], strides = [1, 1]} : vector<4x128xf32> to vector<4x32xf32>
    %262 = arith.mulf %259, %260 : vector<4x32xf32>
    %263 = math.tanh %262 : vector<4x32xf32>
    %264 = arith.mulf %261, %263 : vector<4x32xf32>
    %265 = tpu.concatenate %264, %264 in 1 : vector<4x32xf32>, vector<4x32xf32> -> vector<4x64xf32>
    %266 = arith.mulf %22, %265 : vector<4x64xf32>
    %267 = vector.extract_strided_slice %253 {offsets = [4, 0], sizes = [4, 128], strides = [1, 1]} : vector<32x128xf32> to vector<4x128xf32>
    %268 = arith.truncf %266 : vector<4x64xf32> to vector<4x64xbf16>
    %cst_34 = arith.constant dense<0.000000e+00> : vector<4x128xf32>
    %269 = tpu.matmul %268, %254, %cst_34 {dimension_numbers = #tpu.dot_dimension_numbers<[1], [0], [0], [1], [0, 0, 1, 1], [], []>} : vector<4x64xbf16>, vector<64x128xbf16>, vector<4x128xf32> -> vector<4x128xf32>
    %270 = arith.addf %267, %269 : vector<4x128xf32>
    %271 = math.tanh %270 : vector<4x128xf32>
    %272 = arith.mulf %271, %8 : vector<4x128xf32>
    %273 = arith.addf %272, %11 : vector<4x128xf32>
    %274 = vector.extract_strided_slice %273 {offsets = [0, 0], sizes = [4, 32], strides = [1, 1]} : vector<4x128xf32> to vector<4x32xf32>
    %275 = vector.extract_strided_slice %273 {offsets = [0, 32], sizes = [4, 32], strides = [1, 1]} : vector<4x128xf32> to vector<4x32xf32>
    %276 = vector.extract_strided_slice %273 {offsets = [0, 64], sizes = [4, 32], strides = [1, 1]} : vector<4x128xf32> to vector<4x32xf32>
    %277 = vector.extract_strided_slice %273 {offsets = [0, 96], sizes = [4, 32], strides = [1, 1]} : vector<4x128xf32> to vector<4x32xf32>
    %278 = arith.mulf %275, %262 : vector<4x32xf32>
    %279 = arith.mulf %274, %276 : vector<4x32xf32>
    %280 = arith.addf %278, %279 : vector<4x32xf32>
    %281 = math.tanh %280 : vector<4x32xf32>
    %282 = arith.mulf %277, %281 : vector<4x32xf32>
    %283 = tpu.concatenate %282, %282 in 1 : vector<4x32xf32>, vector<4x32xf32> -> vector<4x64xf32>
    %284 = arith.mulf %22, %283 : vector<4x64xf32>
    %285 = vector.extract_strided_slice %253 {offsets = [8, 0], sizes = [4, 128], strides = [1, 1]} : vector<32x128xf32> to vector<4x128xf32>
    %286 = arith.truncf %284 : vector<4x64xf32> to vector<4x64xbf16>
    %cst_35 = arith.constant dense<0.000000e+00> : vector<4x128xf32>
    %287 = tpu.matmul %286, %254, %cst_35 {dimension_numbers = #tpu.dot_dimension_numbers<[1], [0], [0], [1], [0, 0, 1, 1], [], []>} : vector<4x64xbf16>, vector<64x128xbf16>, vector<4x128xf32> -> vector<4x128xf32>
    %288 = arith.addf %285, %287 : vector<4x128xf32>
    %289 = math.tanh %288 : vector<4x128xf32>
    %290 = arith.mulf %289, %8 : vector<4x128xf32>
    %291 = arith.addf %290, %11 : vector<4x128xf32>
    %292 = vector.extract_strided_slice %291 {offsets = [0, 0], sizes = [4, 32], strides = [1, 1]} : vector<4x128xf32> to vector<4x32xf32>
    %293 = vector.extract_strided_slice %291 {offsets = [0, 32], sizes = [4, 32], strides = [1, 1]} : vector<4x128xf32> to vector<4x32xf32>
    %294 = vector.extract_strided_slice %291 {offsets = [0, 64], sizes = [4, 32], strides = [1, 1]} : vector<4x128xf32> to vector<4x32xf32>
    %295 = vector.extract_strided_slice %291 {offsets = [0, 96], sizes = [4, 32], strides = [1, 1]} : vector<4x128xf32> to vector<4x32xf32>
    %296 = arith.mulf %293, %280 : vector<4x32xf32>
    %297 = arith.mulf %292, %294 : vector<4x32xf32>
    %298 = arith.addf %296, %297 : vector<4x32xf32>
    %299 = math.tanh %298 : vector<4x32xf32>
    %300 = arith.mulf %295, %299 : vector<4x32xf32>
    %301 = tpu.concatenate %300, %300 in 1 : vector<4x32xf32>, vector<4x32xf32> -> vector<4x64xf32>
    %302 = arith.mulf %22, %301 : vector<4x64xf32>
    %303 = vector.extract_strided_slice %253 {offsets = [12, 0], sizes = [4, 128], strides = [1, 1]} : vector<32x128xf32> to vector<4x128xf32>
    %304 = arith.truncf %302 : vector<4x64xf32> to vector<4x64xbf16>
    %cst_36 = arith.constant dense<0.000000e+00> : vector<4x128xf32>
    %305 = tpu.matmul %304, %254, %cst_36 {dimension_numbers = #tpu.dot_dimension_numbers<[1], [0], [0], [1], [0, 0, 1, 1], [], []>} : vector<4x64xbf16>, vector<64x128xbf16>, vector<4x128xf32> -> vector<4x128xf32>
    %306 = arith.addf %303, %305 : vector<4x128xf32>
    %307 = math.tanh %306 : vector<4x128xf32>
    %308 = arith.mulf %307, %8 : vector<4x128xf32>
    %309 = arith.addf %308, %11 : vector<4x128xf32>
    %310 = vector.extract_strided_slice %309 {offsets = [0, 0], sizes = [4, 32], strides = [1, 1]} : vector<4x128xf32> to vector<4x32xf32>
    %311 = vector.extract_strided_slice %309 {offsets = [0, 32], sizes = [4, 32], strides = [1, 1]} : vector<4x128xf32> to vector<4x32xf32>
    %312 = vector.extract_strided_slice %309 {offsets = [0, 64], sizes = [4, 32], strides = [1, 1]} : vector<4x128xf32> to vector<4x32xf32>
    %313 = vector.extract_strided_slice %309 {offsets = [0, 96], sizes = [4, 32], strides = [1, 1]} : vector<4x128xf32> to vector<4x32xf32>
    %314 = arith.mulf %311, %298 : vector<4x32xf32>
    %315 = arith.mulf %310, %312 : vector<4x32xf32>
    %316 = arith.addf %314, %315 : vector<4x32xf32>
    %317 = math.tanh %316 : vector<4x32xf32>
    %318 = arith.mulf %313, %317 : vector<4x32xf32>
    %319 = tpu.concatenate %318, %318 in 1 : vector<4x32xf32>, vector<4x32xf32> -> vector<4x64xf32>
    %320 = arith.mulf %22, %319 : vector<4x64xf32>
    %321 = vector.extract_strided_slice %253 {offsets = [16, 0], sizes = [4, 128], strides = [1, 1]} : vector<32x128xf32> to vector<4x128xf32>
    %322 = arith.truncf %320 : vector<4x64xf32> to vector<4x64xbf16>
    %cst_37 = arith.constant dense<0.000000e+00> : vector<4x128xf32>
    %323 = tpu.matmul %322, %254, %cst_37 {dimension_numbers = #tpu.dot_dimension_numbers<[1], [0], [0], [1], [0, 0, 1, 1], [], []>} : vector<4x64xbf16>, vector<64x128xbf16>, vector<4x128xf32> -> vector<4x128xf32>
    %324 = arith.addf %321, %323 : vector<4x128xf32>
    %325 = math.tanh %324 : vector<4x128xf32>
    %326 = arith.mulf %325, %8 : vector<4x128xf32>
    %327 = arith.addf %326, %11 : vector<4x128xf32>
    %328 = vector.extract_strided_slice %327 {offsets = [0, 0], sizes = [4, 32], strides = [1, 1]} : vector<4x128xf32> to vector<4x32xf32>
    %329 = vector.extract_strided_slice %327 {offsets = [0, 32], sizes = [4, 32], strides = [1, 1]} : vector<4x128xf32> to vector<4x32xf32>
    %330 = vector.extract_strided_slice %327 {offsets = [0, 64], sizes = [4, 32], strides = [1, 1]} : vector<4x128xf32> to vector<4x32xf32>
    %331 = vector.extract_strided_slice %327 {offsets = [0, 96], sizes = [4, 32], strides = [1, 1]} : vector<4x128xf32> to vector<4x32xf32>
    %332 = arith.mulf %329, %316 : vector<4x32xf32>
    %333 = arith.mulf %328, %330 : vector<4x32xf32>
    %334 = arith.addf %332, %333 : vector<4x32xf32>
    %335 = math.tanh %334 : vector<4x32xf32>
    %336 = arith.mulf %331, %335 : vector<4x32xf32>
    %337 = tpu.concatenate %336, %336 in 1 : vector<4x32xf32>, vector<4x32xf32> -> vector<4x64xf32>
    %338 = arith.mulf %22, %337 : vector<4x64xf32>
    %339 = vector.extract_strided_slice %253 {offsets = [20, 0], sizes = [4, 128], strides = [1, 1]} : vector<32x128xf32> to vector<4x128xf32>
    %340 = arith.truncf %338 : vector<4x64xf32> to vector<4x64xbf16>
    %cst_38 = arith.constant dense<0.000000e+00> : vector<4x128xf32>
    %341 = tpu.matmul %340, %254, %cst_38 {dimension_numbers = #tpu.dot_dimension_numbers<[1], [0], [0], [1], [0, 0, 1, 1], [], []>} : vector<4x64xbf16>, vector<64x128xbf16>, vector<4x128xf32> -> vector<4x128xf32>
    %342 = arith.addf %339, %341 : vector<4x128xf32>
    %343 = math.tanh %342 : vector<4x128xf32>
    %344 = arith.mulf %343, %8 : vector<4x128xf32>
    %345 = arith.addf %344, %11 : vector<4x128xf32>
    %346 = vector.extract_strided_slice %345 {offsets = [0, 0], sizes = [4, 32], strides = [1, 1]} : vector<4x128xf32> to vector<4x32xf32>
    %347 = vector.extract_strided_slice %345 {offsets = [0, 32], sizes = [4, 32], strides = [1, 1]} : vector<4x128xf32> to vector<4x32xf32>
    %348 = vector.extract_strided_slice %345 {offsets = [0, 64], sizes = [4, 32], strides = [1, 1]} : vector<4x128xf32> to vector<4x32xf32>
    %349 = vector.extract_strided_slice %345 {offsets = [0, 96], sizes = [4, 32], strides = [1, 1]} : vector<4x128xf32> to vector<4x32xf32>
    %350 = arith.mulf %347, %334 : vector<4x32xf32>
    %351 = arith.mulf %346, %348 : vector<4x32xf32>
    %352 = arith.addf %350, %351 : vector<4x32xf32>
    %353 = math.tanh %352 : vector<4x32xf32>
    %354 = arith.mulf %349, %353 : vector<4x32xf32>
    %355 = tpu.concatenate %354, %354 in 1 : vector<4x32xf32>, vector<4x32xf32> -> vector<4x64xf32>
    %356 = arith.mulf %22, %355 : vector<4x64xf32>
    %357 = vector.extract_strided_slice %253 {offsets = [24, 0], sizes = [4, 128], strides = [1, 1]} : vector<32x128xf32> to vector<4x128xf32>
    %358 = arith.truncf %356 : vector<4x64xf32> to vector<4x64xbf16>
    %cst_39 = arith.constant dense<0.000000e+00> : vector<4x128xf32>
    %359 = tpu.matmul %358, %254, %cst_39 {dimension_numbers = #tpu.dot_dimension_numbers<[1], [0], [0], [1], [0, 0, 1, 1], [], []>} : vector<4x64xbf16>, vector<64x128xbf16>, vector<4x128xf32> -> vector<4x128xf32>
    %360 = arith.addf %357, %359 : vector<4x128xf32>
    %361 = math.tanh %360 : vector<4x128xf32>
    %362 = arith.mulf %361, %8 : vector<4x128xf32>
    %363 = arith.addf %362, %11 : vector<4x128xf32>
    %364 = vector.extract_strided_slice %363 {offsets = [0, 0], sizes = [4, 32], strides = [1, 1]} : vector<4x128xf32> to vector<4x32xf32>
    %365 = vector.extract_strided_slice %363 {offsets = [0, 32], sizes = [4, 32], strides = [1, 1]} : vector<4x128xf32> to vector<4x32xf32>
    %366 = vector.extract_strided_slice %363 {offsets = [0, 64], sizes = [4, 32], strides = [1, 1]} : vector<4x128xf32> to vector<4x32xf32>
    %367 = vector.extract_strided_slice %363 {offsets = [0, 96], sizes = [4, 32], strides = [1, 1]} : vector<4x128xf32> to vector<4x32xf32>
    %368 = arith.mulf %365, %352 : vector<4x32xf32>
    %369 = arith.mulf %364, %366 : vector<4x32xf32>
    %370 = arith.addf %368, %369 : vector<4x32xf32>
    %371 = math.tanh %370 : vector<4x32xf32>
    %372 = arith.mulf %367, %371 : vector<4x32xf32>
    %373 = tpu.concatenate %372, %372 in 1 : vector<4x32xf32>, vector<4x32xf32> -> vector<4x64xf32>
    %374 = arith.mulf %22, %373 : vector<4x64xf32>
    %375 = vector.extract_strided_slice %253 {offsets = [28, 0], sizes = [4, 128], strides = [1, 1]} : vector<32x128xf32> to vector<4x128xf32>
    %376 = arith.truncf %374 : vector<4x64xf32> to vector<4x64xbf16>
    %cst_40 = arith.constant dense<0.000000e+00> : vector<4x128xf32>
    %377 = tpu.matmul %376, %254, %cst_40 {dimension_numbers = #tpu.dot_dimension_numbers<[1], [0], [0], [1], [0, 0, 1, 1], [], []>} : vector<4x64xbf16>, vector<64x128xbf16>, vector<4x128xf32> -> vector<4x128xf32>
    %378 = arith.addf %375, %377 : vector<4x128xf32>
    %379 = math.tanh %378 : vector<4x128xf32>
    %380 = arith.mulf %379, %8 : vector<4x128xf32>
    %381 = arith.addf %380, %11 : vector<4x128xf32>
    %382 = vector.extract_strided_slice %381 {offsets = [0, 0], sizes = [4, 32], strides = [1, 1]} : vector<4x128xf32> to vector<4x32xf32>
    %383 = vector.extract_strided_slice %381 {offsets = [0, 32], sizes = [4, 32], strides = [1, 1]} : vector<4x128xf32> to vector<4x32xf32>
    %384 = vector.extract_strided_slice %381 {offsets = [0, 64], sizes = [4, 32], strides = [1, 1]} : vector<4x128xf32> to vector<4x32xf32>
    %385 = vector.extract_strided_slice %381 {offsets = [0, 96], sizes = [4, 32], strides = [1, 1]} : vector<4x128xf32> to vector<4x32xf32>
    %386 = arith.mulf %383, %370 : vector<4x32xf32>
    %387 = arith.mulf %382, %384 : vector<4x32xf32>
    %388 = arith.addf %386, %387 : vector<4x32xf32>
    %389 = math.tanh %388 : vector<4x32xf32>
    %390 = arith.mulf %385, %389 : vector<4x32xf32>
    %391 = vector.extract_strided_slice %390 {offsets = [0, 0], sizes = [2, 32], strides = [1, 1]} : vector<4x32xf32> to vector<2x32xf32>
    %392 = vector.extract_strided_slice %390 {offsets = [2, 0], sizes = [2, 32], strides = [1, 1]} : vector<4x32xf32> to vector<2x32xf32>
    %393 = tpu.concatenate %391, %392 in 1 : vector<2x32xf32>, vector<2x32xf32> -> vector<2x64xf32>
    %c0_41 = arith.constant 0 : index
    %c0_42 = arith.constant 0 : index
    %394 = vector.load %arg7[%c0_41, %c0_42] : memref<64x32xf32, #tpu.memory_space<vmem>>, vector<64x32xf32>
    %cst_43 = arith.constant dense<0.000000e+00> : vector<2x32xf32>
    %395 = tpu.matmul %393, %394, %cst_43 {dimension_numbers = #tpu.dot_dimension_numbers<[1], [0], [0], [1], [0, 0, 1, 1], [], []>} : vector<2x64xf32>, vector<64x32xf32>, vector<2x32xf32> -> vector<2x32xf32>
    %c0_44 = arith.constant 0 : index
    %c0_45 = arith.constant 0 : index
    %396 = vector.load %arg8[%c0_44, %c0_45] : memref<1x32xf32, #tpu.memory_space<vmem>>, vector<1x32xf32>
    %397 = vector.broadcast %396 : vector<1x32xf32> to vector<2x32xf32>
    %398 = arith.addf %395, %397 : vector<2x32xf32>
    %cst_46 = arith.constant 0.000000e+00 : f32
    %399 = vector.broadcast %cst_46 : f32 to vector<2x32xf32>
    %400 = arith.maximumf %398, %399 : vector<2x32xf32>
    %c0_47 = arith.constant 0 : index
    %c0_48 = arith.constant 0 : index
    %401 = vector.load %arg9[%c0_47, %c0_48] : memref<32x4xf32, #tpu.memory_space<vmem>>, vector<32x4xf32>
    %cst_49 = arith.constant dense<0.000000e+00> : vector<2x4xf32>
    %402 = tpu.matmul %400, %401, %cst_49 {dimension_numbers = #tpu.dot_dimension_numbers<[1], [0], [0], [1], [0, 0, 1, 1], [], []>} : vector<2x32xf32>, vector<32x4xf32>, vector<2x4xf32> -> vector<2x4xf32>
    %c0_50 = arith.constant 0 : index
    %c0_51 = arith.constant 0 : index
    %403 = vector.load %arg10[%c0_50, %c0_51] : memref<1x4xf32, #tpu.memory_space<vmem>>, vector<1x4xf32>
    %404 = vector.broadcast %403 : vector<1x4xf32> to vector<2x4xf32>
    %405 = arith.addf %402, %404 : vector<2x4xf32>
    %c0_52 = arith.constant 0 : index
    %c0_53 = arith.constant 0 : index
    %406 = vector.load %arg11[%c0_52, %c0_53] : memref<2x4xf32, #tpu.memory_space<vmem>>, vector<2x4xf32>
    tpu.vector_store %arg11[%c0_52, %c0_53], %405 {strides = array<i32>} : memref<2x4xf32, #tpu.memory_space<vmem>>, vector<2x4xf32>,
    return
  }
}

</mosaic_0001>

<bundles_post_ra>
// kernel: lstm_baseline_forward.1
= control target key start
LH: loop header
LB: loop body
LE: loop exit
PB: predicated region body
PF: predicated region fallthrough
CT: control target
= control target key end

     0   :  { %16 = vsyncpa [#allocation3], 0  ;;  %s3269_s0 = inlined_call_operand.hbm [shape: f32[2,8,8], index: 0, kind: input, shape index: {}]   ;;  %s3270_s1 = inlined_call_operand.hbm [shape: bf16[8,256], index: 1, kind: input, shape index: {}]   ;;  %s3271_s2 = inlined_call_operand.vmem [shape: f32[1,256], index: 2, kind: input, shape index: {}]   ;;  %s3272_s3 = inlined_call_operand.vmem [shape: bf16[64,128], index: 3, kind: input, shape index: {}]   ;;  %s3273_s4 = inlined_call_operand.vmem [shape: bf16[64,256], index: 4, kind: input, shape index: {}]   ;;  %s3274_s5 = inlined_call_operand.hbm [shape: f32[1,256], index: 5, kind: input, shape index: {}]   ;;  %s3275_s6 = inlined_call_operand.vmem [shape: bf16[64,128], index: 6, kind: input, shape index: {}]   ;;  %s3276_s7 = inlined_call_operand.vmem [shape: f32[64,32], index: 7, kind: input, shape index: {}]   ;;  %s3277_s8 = inlined_call_operand.hbm [shape: f32[1,32], index: 8, kind: input, shape index: {}]   ;;  %s3278_s9 = inlined_call_operand.vmem [shape: f32[32,4], index: 9, kind: input, shape index: {}]   ;;  %s3279_s10 = inlined_call_operand.hbm [shape: f32[1,4], index: 10, kind: input, shape index: {}]   ;;  %s3280_s11 = inlined_call_operand.hbm [shape: f32[2,4], index: 11, kind: output, shape index: {}]  }
   0x1   :  { %17 = vsyncpa [#allocation6], 0 }
   0x2   :  { %18 = vsyncpa [#allocation9], 0 }
   0x3   :  { %19 = vsyncpa [#allocation4], 0  ;;  %s2534_s17 = smov [#allocation5]   ;;  %s2535_s19 = smov [#allocation8]  }
   0x4   :  { %s38_s18 = sshll.u32 %s2534_s17, 4  ;;  %s68_s20 = sshll.u32 %s2535_s19, 4  ;;  %s39_s18 = int_to_ptr.vmem [resolvable:$true] %s38_s18  ;;  %s69_s20 = int_to_ptr.vmem [resolvable:$true] %s68_s20 }
   0x5   :  { %s2394_s23 = scalar_lea.hbm %s3270_s1, 128 }
   0x6   :  { %p2395_p0 = scmp.ne.s32.totalorder %s3270_s1, %s2394_s23  ;;  %p2398_p1 = scmp.lt.u32.totalorder %s2394_s23, %s3270_s1 }
   0x8   :  { %p2400_p2 = pnand %p2398_p1, %p2395_p0 }
   0xa   :  { %2403 = shalt.err (!%p2400_p2)
}
   0xb   :  { %s2404_s28 = scalar_lea.vmem %s39_s18, 128  ;;  %p2409_p4 = scmp.lt.s32.totalorder %s39_s18, %s39_s18 }
   0xc   :  { %p2405_p3 = scmp.ne.s32.totalorder %s39_s18, %s2404_s28  ;;  %p2410_p5 = scmp.lt.s32.totalorder %s2404_s28, %s2404_s28 }
   0xe   :  { %p2411_p6 = por %p2410_p5, %p2409_p4 }
  0x10   :  { %p2412_p7 = pnand %p2411_p6, %p2405_p3 }
  0x12   :  { %2415 = shalt.err (!%p2412_p7)
}
  0x13   :  { %41 = dma.hbm_to_vmem [thread:$0]  %s3270_s1, 128, %s39_s18, [#allocation6]  }
  0x14   :  { %s2416_s14 = scalar_lea.hbm %s3277_s8, 16 }
  0x15   :  { %p2417_p8 = scmp.ne.s32.totalorder %s3277_s8, %s2416_s14  ;;  %p2420_p9 = scmp.lt.u32.totalorder %s2416_s14, %s3277_s8 }
  0x17   :  { %p2422_p10 = pnand %p2420_p9, %p2417_p8 }
  0x19   :  { %2425 = shalt.err (!%p2422_p10)
}
  0x1a   :  { %s2426_s21 = scalar_lea.vmem %s69_s20, 16  ;;  %s2430_s22 = scalar_lea.vmem %s69_s20, 32 }
  0x1b   :  { %p2427_p11 = scmp.ne.s32.totalorder %s69_s20, %s2426_s21  ;;  %p2431_p12 = scmp.lt.s32.totalorder %s69_s20, %s69_s20 }
  0x1c   :  { %p2432_p13 = scmp.lt.s32.totalorder %s2430_s22, %s2426_s21 }
  0x1e   :  { %p2433_p0 = por %p2432_p13, %p2431_p12 }
  0x20   :  { %p2434_p1 = pnand %p2433_p0, %p2427_p11 }
  0x22   :  { %2437 = shalt.err (!%p2434_p1)
}
  0x23   :  { %71 = dma.hbm_to_vmem [thread:$0]  %s3277_s8, 16, %s69_s20, [#allocation9]  }
  0x24   :  { %s2536_s23 = smov [#allocation2]   ;;  %s2438_s27 = scalar_lea.hbm %s3269_s0, 256 }
  0x25   :  { %s25_s24 = sshll.u32 %s2536_s23, 4  ;;  %p2439_p2 = scmp.ne.s32.totalorder %s3269_s0, %s2438_s27  ;;  %s26_s24 = int_to_ptr.vmem [resolvable:$true] %s25_s24 }
  0x26   :  { %p2442_p3 = scmp.lt.u32.totalorder %s2438_s27, %s3269_s0 }
  0x28   :  { %p2444_p4 = pnand %p2442_p3, %p2439_p2 }
  0x2a   :  { %2447 = shalt.err (!%p2444_p4)
}
  0x2b   :  { %s2448_s13 = scalar_lea.vmem %s26_s24, 256  ;;  %p2453_p6 = scmp.lt.s32.totalorder %s26_s24, %s26_s24 }
  0x2c   :  { %p2449_p5 = scmp.ne.s32.totalorder %s26_s24, %s2448_s13  ;;  %p2454_p7 = scmp.lt.s32.totalorder %s2448_s13, %s2448_s13 }
  0x2e   :  { %p2455_p8 = por %p2454_p7, %p2453_p6 }
  0x30   :  { %p2456_p9 = pnand %p2455_p8, %p2449_p5 }
  0x32   :  { %2459 = shalt.err (!%p2456_p9)
}
  0x33   :  { %s2537_s8 = smov 128   ;;  %s2538_s20 = smov 8  }
  0x34   :  { %31 = dma.hbm_to_vmem [thread:$0]  %s3269_s0, 256, %s26_s24, [#allocation3], %s2537_s8, %s2537_s8, %s2538_s20  }
  0x35   :  { %s2539_s16 = smov [#allocation7]   ;;  %s2540_s19 = smov [#allocation10]  }
  0x36   :  { %s54_s17 = sshll.u32 %s2539_s16, 4  ;;  %s80_s21 = sshll.u32 %s2540_s19, 4  ;;  %s55_s17 = int_to_ptr.vmem [resolvable:$true] %s54_s17  ;;  %s81_s21 = int_to_ptr.vmem [resolvable:$true] %s80_s21 }
  0x37   :  { %s2460_s18 = scalar_lea.hbm %s3274_s5, 32 }
  0x38   :  { %p2461_p10 = scmp.ne.s32.totalorder %s3274_s5, %s2460_s18  ;;  %p2464_p11 = scmp.lt.u32.totalorder %s2460_s18, %s3274_s5 }
  0x3a   :  { %p2466_p12 = pnand %p2464_p11, %p2461_p10 }
  0x3c   :  { %2469 = shalt.err (!%p2466_p12)
}
  0x3d   :  { %s2470_s0 = scalar_lea.vmem %s55_s17, 32  ;;  %p2475_p0 = scmp.lt.s32.totalorder %s55_s17, %s55_s17 }
  0x3e   :  { %p2471_p13 = scmp.ne.s32.totalorder %s55_s17, %s2470_s0  ;;  %p2476_p1 = scmp.lt.s32.totalorder %s2470_s0, %s2470_s0 }
  0x40   :  { %p2477_p2 = por %p2476_p1, %p2475_p0 }
  0x42   :  { %p2478_p3 = pnand %p2477_p2, %p2471_p13 }
  0x44   :  { %2481 = shalt.err (!%p2478_p3)
}
  0x45   :  { %57 = dma.hbm_to_vmem [thread:$0]  %s3274_s5, 32, %s55_s17, [#allocation6]  }
  0x46   :  { %s2482_s12 = scalar_lea.hbm %s3279_s10, 16 }
  0x47   :  { %p2483_p4 = scmp.ne.s32.totalorder %s3279_s10, %s2482_s12  ;;  %p2486_p5 = scmp.lt.u32.totalorder %s2482_s12, %s3279_s10 }
  0x49   :  { %p2488_p6 = pnand %p2486_p5, %p2483_p4 }
  0x4b   :  { %2491 = shalt.err (!%p2488_p6)
}
  0x4c   :  { %s2492_s15 = scalar_lea.vmem %s81_s21, 16  ;;  %s2496_s16 = scalar_lea.vmem %s81_s21, 32 }
  0x4d   :  { %p2493_p7 = scmp.ne.s32.totalorder %s81_s21, %s2492_s15  ;;  %p2497_p8 = scmp.lt.s32.totalorder %s81_s21, %s81_s21 }
  0x4e   :  { %p2498_p9 = scmp.lt.s32.totalorder %s2496_s16, %s2492_s15 }
  0x50   :  { %p2499_p10 = por %p2498_p9, %p2497_p8 }
  0x52   :  { %p2500_p11 = pnand %p2499_p10, %p2493_p7 }
  0x54   :  { %2503 = shalt.err (!%p2500_p11)
}
  0x55   :  { %83 = dma.hbm_to_vmem [thread:$0]  %s3279_s10, 16, %s81_s21, [#allocation9]  }
  0x56   :  { %2526 = dma.done.wait [#allocation3], 256  }
  0x57   :  { %2527 = vsyncadd [#allocation3], 4294967040 }
  0x58   :  { %2528 = dma.done.wait [#allocation6], 160  }
  0x59   :  { %2529 = vsyncadd [#allocation6], 4294967136 }
  0x5a   :  { %2530 = dma.done.wait [#allocation9], 32  }
  0x5b   :  { %2531 = vsyncadd [#allocation9], 4294967264  ;;  %v2541_v0 = vmov 0   ;;  %v117_v1 = vld [vmem:[#allocation5] sm:$0xff]  ;;  %vm139_vm0 = vcmask 1043456   ;;  %v114_v2 = vld [vmem:[#allocation2] sm:$0xff]  ;;  %v100_v10 = vlaneseq }
  0x5c   :  { %178 = vmatprep.mubr.bf16.mxu0 %v2541_v0  ;;  %223 = vmatprep.mubr.bf16.mxu1 %v2541_v0  ;;  %v115_v3 = vld [vmem:[#allocation2 + $0x8] sm:$0xff]  ;;  %v1941_v4 = vcombine.high %v117_v1, %v117_v1  ;;  %v1940_v5 = vcombine.low %v117_v1, %v117_v1  ;;  %vm135_vm1 = vcmask 64512   ;;  %v116_v7 = vpack.c.bf16 %v114_v2, %v114_v2  ;;  %v118_v13 = vld [vmem:[%s3271_s2] sm:$0x3]  ;;  %s2544_s2 = smov 64   ;;  %s2545_s23 = smov 96  }
  0x5d   :  { %v187_v8 = vpack.c.bf16 %v115_v3, %v115_v3  ;;  %v2542_v9 = vmov 0.0   ;;  %v2678_v11 = vshrl.u32 %v100_v10, 7  ;;  %v2689_v17 = vand.u32 127, %v100_v10 }
  0x5e   :  { %1942 = vmatprep.subr.msk.bf16.mxu0 %vm139_vm0, %v1941_v4  ;;  %1944 = vmatprep.subr.msk.bf16.mxu1 %vm139_vm0, %v1941_v4  ;;  %v141_v6 = vsel %vm139_vm0, %v1940_v5, 0  ;;  %vm264_vm2 = vcmask 1040384   ;;  %vm266_vm3 = vcmask 1041408   ;;  %vm268_vm4 = vcmask 1042432  }
  0x5f   :  { %147 = vmatpush1.bf16.msra.mxu0 %v141_v6  ;;  %192 = vmatpush1.bf16.msra.mxu1 %v141_v6  ;;  %v122_v12 = vsub.s32 0, %v2678_v11  ;;  %v126_v14 = vsub.s32 1, %v2678_v11  ;;  %vm271_vm5 = vcmask 1044480   ;;  %vm273_vm6 = vcmask 1045504  }
  0x60   :  { %2065 = vmatprep.subr.bf16.mxu0 %v2542_v9  ;;  %2077 = vmatprep.subr.bf16.mxu1 %v2542_v9  ;;  %vm275_vm7 = vcmask 1046528   ;;  %vm102_vm8 = vcmp.ge.s32.totalorder %v2689_v17, 64  ;;  %vm103_vm9 = vcmp.lt.s32.totalorder %v2689_v17, 96  ;;  %vm2546_vm11 = vmmov 0  }
  0x61   :  { %v123_v15 = vrot.slane %v118_v13, %v122_v12  ;;  %v127_v16 = vrot.slane %v118_v13, %v126_v14  ;;  %vm104_vm10 = vmand %vm102_vm8, %vm103_vm9  ;;  %vm109_vm12 = vcmp.lt.s32.totalorder %v2678_v11, 2  ;;  %vm110_vm13 = vcmp.lt.s32.totalorder %v2689_v17, 32 }
  0x62   :  { %1943 = vmatmul.mubr.msk.bf16.vlgmr.msra.gmra.mrb[0].mxu0 %vm135_vm1, %v116_v7  ;;  %1945 = vmatmul.mubr.msk.bf16.vlgmr.msra.gmra.mrb[0].mxu1 %vm135_vm1, %v187_v8  ;;  %vm111_vm14 = vmxor %vm109_vm12, %vm110_vm13  ;;  %vm2548_vm15 = vmmov 1  }
  0x63   :  { %2073 = vmatprep.mubr.msk.bf16.mxu0 %vm2546_vm11, %v2542_v9  ;;  %2085 = vmatprep.mubr.msk.bf16.mxu1 %vm2546_vm11, %v2542_v9  ;;  %vm112_vm1 = vmxor %vm111_vm14, %vm2548_vm15 }
 0x135   :  { %v180_v18 = vpop.f32.mrb[0].mxu0  ;;  %v225_v19 = vpop.f32.mrb[0].mxu1 }
 0x136   :  { %v2691_v20 = vadd.f32 %v180_v18, %v123_v15  ;;  %v2693_v21 = vadd.f32 %v225_v19, %v123_v15  ;;  %v182_v22 = vpop.f32.mrb[1].mxu0  ;;  %v227_v23 = vpop.f32.mrb[1].mxu1 }
 0x137   :  { %v2695_v24 = vadd.f32 %v182_v22, %v127_v16  ;;  %v2697_v25 = vadd.f32 %v227_v23, %v127_v16  ;;  %v184_v26 = vpop.f32.mrb[2].mxu0  ;;  %v229_v27 = vpop.f32.mrb[2].mxu1 }
 0x138   :  { %v233_v28 = vrot.slane %v2693_v21, 7  ;;  %v185_v29 = vpop.f32.mrb[3].mxu0  ;;  %v230_v30 = vpop.f32.mrb[3].mxu1  ;;  %v248_v31 = vrot.slane %v2691_v20, 2  ;;  %v242_v34 = vrot.slane %v2691_v20, 5  ;;  %v250_v35 = vrot.slane %v2693_v21, 1 }
 0x139   :  { %v236_v32 = vrot.slane %v2695_v24, 5  ;;  %v239_v33 = vrot.slane %v2697_v25, 4  ;;  %v244_v36 = vrot.slane %v2693_v21, 4  ;;  %v252_v38 = vrot.slane %v2695_v24, 3 }
 0x13a   :  { %v265_v37 = vsel %vm264_vm2, %v2691_v20, %v233_v28  ;;  %v254_v39 = vrot.slane %v2697_v25, 2  ;;  %v246_v40 = vrot.slane %v2697_v25, 7  ;;  %v256_v42 = vrot.slane %v2691_v20, 7 }
 0x13b   :  { %v267_v41 = vsel %vm266_vm3, %v265_v37, %v236_v32  ;;  %v258_v43 = vrot.slane %v2693_v21, 6  ;;  %v277_v45 = vsel %vm264_vm2, %v248_v31, %v250_v35  ;;  %v284_v46 = vrot.slane %v2691_v20, 4 }
 0x13c   :  { %v269_v44 = vsel %vm268_vm4, %v267_v41, %v239_v33  ;;  %v286_v47 = vrot.slane %v2693_v21, 3  ;;  %v260_v49 = vrot.slane %v2695_v24, 6  ;;  %v278_v50 = vsel %vm266_vm3, %v277_v45, %v252_v38  ;;  %v2786_v38 = vld [vmem:[%s3272_s3 + $0x8] sm:$0xff]  }
 0x13d   :  { %v270_v48 = vsel %vm139_vm0, %v269_v44, %v242_v34  ;;  %v288_v51 = vrot.slane %v2695_v24, 1  ;;  %v262_v53 = vrot.slane %v2697_v25, 5  ;;  %v279_v54 = vsel %vm268_vm4, %v278_v50, %v254_v39  ;;  %v2799_v39 = vld [vmem:[%s3272_s3 + $0x10] sm:$0xff]  }
 0x13e   :  { %v272_v52 = vsel %vm271_vm5, %v270_v48, %v244_v36  ;;  %v290_v55 = vrot.slane %v2691_v20, 1  ;;  %v280_v57 = vsel %vm139_vm0, %v279_v54, %v256_v42  ;;  %v312_v58 = vsel %vm264_vm2, %v284_v46, %v286_v47  ;;  %v2780_v36 = vld [vmem:[%s3272_s3] sm:$0xff]  }
 0x13f   :  { %v274_v56 = vsel %vm273_vm6, %v272_v52, %v2695_v24  ;;  %v296_v59 = vrot.slane %v2691_v20, 6  ;;  %v281_v61 = vsel %vm271_vm5, %v280_v57, %v258_v43  ;;  %v313_v62 = vsel %vm266_vm3, %v312_v58, %v288_v51  ;;  %2066 = vmatpush3.bf16.msra.mxu0 %v2780_v36  ;;  %2078 = vmatpush3.bf16.msra.mxu1 %v2780_v36 }
 0x140   :  { %v2732_v60 = vsel %vm275_vm7, %v274_v56, %v246_v40  ;;  %v298_v63 = vrot.slane %v2693_v21, 5  ;;  %v282_v1 = vsel %vm273_vm6, %v281_v61, %v260_v49  ;;  %v314_v2 = vsel %vm268_vm4, %v313_v62, %v2697_v25  ;;  %2067 = vmatprep.subr.bf16.mxu0 %v2542_v9  ;;  %2079 = vmatprep.subr.bf16.mxu1 %v2542_v9  ;;  %v2808_v40 = vld [vmem:[%s3272_s3 + $0x18] sm:$0xff]   ;;  %s2547_s3 = smov 32  }
 0x141   :  { %2330 = vtanh.f32 %v2732_v60  ;;  %v300_v3 = vrot.slane %v2695_v24, 7  ;;  %v2743_v4 = vsel %vm275_vm7, %v282_v1, %v262_v53  ;;  %v292_v5 = vrot.slane %v2695_v24, 4 }
 0x142   :  { %v315_v6 = vsel %vm139_vm0, %v314_v2, %v290_v55  ;;  %v302_v7 = vrot.slane %v2697_v25, 6  ;;  %v294_v8 = vrot.slane %v2697_v25, 3  ;;  %v319_v15 = vsel %vm264_vm2, %v296_v59, %v298_v63 }
 0x143   :  { %v316_v10 = vsel %vm271_vm5, %v315_v6, %v2693_v21  ;;  %v304_v18 = vrot.slane %v2691_v20, 3  ;;  %v320_v19 = vsel %vm266_vm3, %v319_v15, %v300_v3  ;;  %v306_v22 = vrot.slane %v2693_v21, 2  ;;  %2068 = vmatpush3.bf16.msra.mxu0 %v2786_v38  ;;  %2080 = vmatpush3.bf16.msra.mxu1 %v2786_v38 }
 0x144   :  { %v317_v13 = vsel %vm273_vm6, %v316_v10, %v292_v5  ;;  %v321_v23 = vsel %vm268_vm4, %v320_v19, %v302_v7  ;;  %v308_v26 = vrot.slane %v2695_v24, 2  ;;  %v310_v28 = vrot.slane %v2697_v25, 1  ;;  %2069 = vmatprep.subr.bf16.mxu0 %v2542_v9  ;;  %2081 = vmatprep.subr.bf16.mxu1 %v2542_v9 }
 0x145   :  { %v2756_v16 = vsel %vm275_vm7, %v317_v13, %v294_v8  ;;  %v322_v27 = vsel %vm139_vm0, %v321_v23, %v304_v18  ;;  %v2543_v30 = vmov 0.5   ;;  %vm355_vm2 = vcmask 261120  }
 0x146   :  { %v323_v29 = vsel %vm271_vm5, %v322_v27, %v306_v22  ;;  %v2766_v31 = vsel %vm104_vm10, 1.0, %v2543_v30  ;;  %v2772_v21 = vsel %vm104_vm10, 0.0, %v2543_v30  ;;  %v2828_v45 = vsel %vm112_vm1, 1.0, %v2542_v9 }
 0x147   :  { %v324_v20 = vsel %vm273_vm6, %v323_v29, %v308_v26  ;;  %2070 = vmatpush3.bf16.msra.mxu0 %v2799_v39  ;;  %2082 = vmatpush3.bf16.msra.mxu1 %v2799_v39  ;;  %vm383_vm4 = vcmask 523264  }
 0x148   :  { %v2770_v32 = vsel %vm275_vm7, %v324_v20, %v310_v28  ;;  %2071 = vmatprep.subr.bf16.mxu0 %v2542_v9  ;;  %2083 = vmatprep.subr.bf16.mxu1 %v2542_v9 }
 0x14b   :  { %v2331_v33 = vpop.eup %2330  ;;  %2072 = vmatpush3.bf16.msra.mxu0 %v2808_v40  ;;  %2084 = vmatpush3.bf16.msra.mxu1 %v2808_v40 }
 0x14c   :  { %v335_v34 = vmul.f32 %v2331_v33, %v2766_v31  ;;  %2089 = vmatprep.subr.bf16.mxu0 %v2542_v9  ;;  %2101 = vmatprep.subr.bf16.mxu1 %v2542_v9 }
 0x14e   :  { %v336_v24 = vadd.f32 %v335_v34, %v2772_v21 }
 0x150   :  { %338 = vrot.lane.b32.xlu0 %v336_v24, %s2544_s2 }
 0x1c2   :  { %v339_v25 = vpop.permute.xlu0 %338 }
 0x1c3   :  { %v341_v35 = vmul.f32 %v339_v25, %v336_v24 }
 0x1c5   :  { %2332 = vtanh.f32 %v341_v35  ;;  %v435_v43 = vrot.slane %v341_v35, 4 }
 0x1cf   :  { %v2333_v37 = vpop.eup %2332 }
 0x1d0   :  { %344 = vrot.lane.b32.xlu0 %v2333_v37, %s2545_s23 }
 0x242   :  { %v345_v41 = vpop.permute.xlu0 %344 }
 0x243   :  { %v2818_v42 = vmul.f32 %v345_v41, %v336_v24 }
 0x245   :  { %349 = vrot.lane.b32.xlu1 %v2818_v42, %s2547_s3 }
 0x249   :  { %352 = vrot.lane.b32.xlu1 %v2818_v42, %s2544_s2 }
 0x24d   :  { %436 = vrot.lane.b32.xlu1 %v435_v43, %s2547_s3 }
 0x2b7   :  { %v350_v44 = vpop.permute.xlu1 %349 }
 0x2bb   :  { %v353_v46 = vpop.permute.xlu1 %352 }
 0x2bc   :  { %v356_v47 = vsel %vm355_vm2, %v350_v44, %v353_v46 }
 0x2bd   :  { %v357_v48 = vmul.f32 %v356_v47, %v2828_v45 }
 0x2bf   :  { %v358_v49 = vpack.c.bf16 %v357_v48, %v357_v48  ;;  %v437_v61 = vpop.permute.xlu1 %436 }
 0x2c1   :  { %2074 = vmatmul.mubr.msk.bf16.vlgmr.msra.gmra.mrb[4].mxu0 %vm383_vm4, %v358_v49 }
 0x2c2   :  { %2090 = vmatpush3.bf16.msra.mxu0 %v2780_v36  ;;  %2097 = vmatprep.mubr.msk.bf16.mxu0 %vm2546_vm11, %v2542_v9 }
 0x2c3   :  { %2091 = vmatprep.subr.bf16.mxu0 %v2542_v9 }
 0x2c6   :  { %2092 = vmatpush3.bf16.msra.mxu0 %v2786_v38 }
 0x2c7   :  { %2093 = vmatprep.subr.bf16.mxu0 %v2542_v9 }
 0x2ca   :  { %2094 = vmatpush3.bf16.msra.mxu0 %v2799_v39 }
 0x2cb   :  { %2095 = vmatprep.subr.bf16.mxu0 %v2542_v9 }
 0x2ce   :  { %2096 = vmatpush3.bf16.msra.mxu0 %v2808_v40 }
 0x2cf   :  { %2113 = vmatprep.subr.bf16.mxu0 %v2542_v9 }
 0x394   :  { %v421_v17 = vpop.f32.mrb[4].mxu0 }
 0x395   :  { %v428_v50 = vrot.slane %v421_v17, 4  ;;  %v2075_v51 = vpop.f32.mrb[5].mxu0 }
 0x396   :  { %v424_v52 = vpop.f32.mrb[6].mxu0 }
 0x397   :  { %v430_v53 = vadd.f32 %v428_v50, %v2732_v60  ;;  %v2076_v54 = vpop.f32.mrb[7].mxu0 }
 0x399   :  { %2334 = vtanh.f32 %v430_v53 }
 0x3a3   :  { %v2335_v55 = vpop.eup %2334 }
 0x3a4   :  { %v432_v56 = vmul.f32 %v2335_v55, %v2766_v31 }
 0x3a6   :  { %v433_v57 = vadd.f32 %v432_v56, %v2772_v21 }
 0x3a8   :  { %441 = vrot.lane.b32.xlu0 %v433_v57, %s2544_s2  ;;  %v439_v62 = vmul.f32 %v437_v61, %v433_v57 }
 0x41a   :  { %v442_v58 = vpop.permute.xlu0 %441 }
 0x41b   :  { %v444_v59 = vmul.f32 %v442_v58, %v433_v57 }
 0x41d   :  { %446 = vrot.lane.b32.xlu0 %v444_v59, %s2547_s3 }
 0x48f   :  { %v447_v63 = vpop.permute.xlu0 %446 }
 0x490   :  { %v449_v1 = vadd.f32 %v447_v63, %v439_v62 }
 0x492   :  { %2336 = vtanh.f32 %v449_v1  ;;  %v517_v20 = vrot.slane %v449_v1, 4 }
 0x49c   :  { %v2337_v2 = vpop.eup %2336 }
 0x49d   :  { %452 = vrot.lane.b32.xlu1 %v2337_v2, %s2544_s2 }
 0x50f   :  { %v453_v60 = vpop.permute.xlu1 %452 }
 0x510   :  { %v2849_v3 = vmul.f32 %v453_v60, %v433_v57 }
 0x512   :  { %460 = vrot.lane.b32.xlu1 %v2849_v3, %s2544_s2  ;;  %457 = vrot.lane.b32.xlu0 %v2849_v3, %s2547_s3 }
 0x584   :  { %v461_v5 = vpop.permute.xlu1 %460  ;;  %v458_v6 = vpop.permute.xlu0 %457 }
 0x585   :  { %v463_v7 = vsel %vm355_vm2, %v458_v6, %v461_v5 }
 0x586   :  { %v465_v8 = vrot.slane %v463_v7, 4 }
 0x588   :  { %v467_v10 = vmul.f32 %v465_v8, %v2828_v45 }
 0x58a   :  { %v468_v13 = vpack.c.bf16 %v467_v10, %v467_v10 }
 0x58c   :  { %2086 = vmatmul.mubr.msk.bf16.vlgmr.msra.gmra.mrb[4].mxu1 %vm383_vm4, %v468_v13 }
 0x58d   :  { %2102 = vmatpush3.bf16.msra.mxu1 %v2780_v36  ;;  %2109 = vmatprep.mubr.msk.bf16.mxu1 %vm2546_vm11, %v2542_v9 }
 0x58e   :  { %2103 = vmatprep.subr.bf16.mxu1 %v2542_v9 }
 0x591   :  { %2104 = vmatpush3.bf16.msra.mxu1 %v2786_v38 }
 0x592   :  { %2105 = vmatprep.subr.bf16.mxu1 %v2542_v9 }
 0x595   :  { %2106 = vmatpush3.bf16.msra.mxu1 %v2799_v39 }
 0x596   :  { %2107 = vmatprep.subr.bf16.mxu1 %v2542_v9 }
 0x599   :  { %2108 = vmatpush3.bf16.msra.mxu1 %v2808_v40 }
 0x59a   :  { %2125 = vmatprep.subr.bf16.mxu1 %v2542_v9 }
 0x65f   :  { %v506_v15 = vpop.f32.mrb[4].mxu1 }
 0x660   :  { %v512_v18 = vadd.f32 %v506_v15, %v2743_v4  ;;  %v2087_v19 = vpop.f32.mrb[5].mxu1 }
 0x661   :  { %v509_v22 = vpop.f32.mrb[6].mxu1 }
 0x662   :  { %2338 = vtanh.f32 %v512_v18  ;;  %v2088_v23 = vpop.f32.mrb[7].mxu1 }
 0x66c   :  { %v2339_v26 = vpop.eup %2338 }
 0x66d   :  { %v514_v27 = vmul.f32 %v2339_v26, %v2766_v31 }
 0x66f   :  { %v515_v28 = vadd.f32 %v514_v27, %v2772_v21 }
 0x671   :  { %521 = vrot.lane.b32.xlu0 %v515_v28, %s2544_s2  ;;  %v519_v33 = vmul.f32 %v517_v20, %v515_v28 }
 0x6e3   :  { %v522_v29 = vpop.permute.xlu0 %521 }
 0x6e4   :  { %v524_v30 = vmul.f32 %v522_v29, %v515_v28 }
 0x6e6   :  { %526 = vrot.lane.b32.xlu1 %v524_v30, %s2547_s3 }
 0x758   :  { %v527_v34 = vpop.permute.xlu1 %526 }
 0x759   :  { %v529_v24 = vadd.f32 %v527_v34, %v519_v33 }
 0x75b   :  { %2340 = vtanh.f32 %v529_v24  ;;  %v597_v58 = vrot.slane %v529_v24, 4 }
 0x765   :  { %v2341_v25 = vpop.eup %2340 }
 0x766   :  { %532 = vrot.lane.b32.xlu0 %v2341_v25, %s2544_s2 }
 0x7d8   :  { %v533_v35 = vpop.permute.xlu0 %532 }
 0x7d9   :  { %v535_v37 = vmul.f32 %v533_v35, %v515_v28 }
 0x7db   :  { %540 = vrot.lane.b32.xlu0 %v535_v37, %s2544_s2  ;;  %537 = vrot.lane.b32.xlu1 %v535_v37, %s2547_s3  ;;  %v938_v1 = vrot.slane %v535_v37, 4 }
 0x84d   :  { %v541_v41 = vpop.permute.xlu0 %540  ;;  %v538_v43 = vpop.permute.xlu1 %537 }
 0x84e   :  { %v543_v44 = vsel %vm355_vm2, %v538_v43, %v541_v41 }
 0x84f   :  { %v544_v46 = vmul.f32 %v543_v44, %v2828_v45 }
 0x851   :  { %v545_v47 = vpack.c.bf16 %v544_v46, %v544_v46 }
 0x853   :  { %2098 = vmatmul.mubr.msk.bf16.vlgmr.msra.gmra.mrb[8].mxu0 %vm383_vm4, %v545_v47 }
 0x854   :  { %2114 = vmatpush3.bf16.msra.mxu0 %v2780_v36  ;;  %2121 = vmatprep.mubr.msk.bf16.mxu0 %vm2546_vm11, %v2542_v9 }
 0x855   :  { %2115 = vmatprep.subr.bf16.mxu0 %v2542_v9 }
 0x858   :  { %2116 = vmatpush3.bf16.msra.mxu0 %v2786_v38 }
 0x859   :  { %2117 = vmatprep.subr.bf16.mxu0 %v2542_v9 }
 0x85c   :  { %2118 = vmatpush3.bf16.msra.mxu0 %v2799_v39 }
 0x85d   :  { %2119 = vmatprep.subr.bf16.mxu0 %v2542_v9 }
 0x860   :  { %2120 = vmatpush3.bf16.msra.mxu0 %v2808_v40 }
 0x861   :  { %2137 = vmatprep.subr.bf16.mxu0 %v2542_v9 }
 0x926   :  { %v583_v48 = vpop.f32.mrb[8].mxu0 }
 0x927   :  { %v590_v49 = vrot.slane %v583_v48, 4  ;;  %v2099_v17 = vpop.f32.mrb[9].mxu0 }
 0x928   :  { %v586_v50 = vpop.f32.mrb[10].mxu0 }
 0x929   :  { %v592_v51 = vadd.f32 %v590_v49, %v2743_v4  ;;  %v2100_v52 = vpop.f32.mrb[11].mxu0  ;;  %v936_v4 = vrot.slane %v2849_v3, 2 }
 0x92b   :  { %2342 = vtanh.f32 %v592_v51  ;;  %v949_v6 = vsel %vm266_vm3, %v2818_v42, %v936_v4 }
 0x92c   :  { %v950_v7 = vsel %vm139_vm0, %v949_v6, %v938_v1 }
 0x935   :  { %v2343_v53 = vpop.eup %2342 }
 0x936   :  { %v594_v54 = vmul.f32 %v2343_v53, %v2766_v31 }
 0x938   :  { %v595_v55 = vadd.f32 %v594_v54, %v2772_v21 }
 0x93a   :  { %601 = vrot.lane.b32.xlu1 %v595_v55, %s2544_s2  ;;  %v599_v59 = vmul.f32 %v597_v58, %v595_v55 }
 0x9ac   :  { %v602_v56 = vpop.permute.xlu1 %601 }
 0x9ad   :  { %v604_v57 = vmul.f32 %v602_v56, %v595_v55 }
 0x9af   :  { %606 = vrot.lane.b32.xlu0 %v604_v57, %s2547_s3 }
 0xa21   :  { %v607_v61 = vpop.permute.xlu0 %606 }
 0xa22   :  { %v609_v62 = vadd.f32 %v607_v61, %v599_v59 }
 0xa24   :  { %2344 = vtanh.f32 %v609_v62  ;;  %v677_v35 = vrot.slane %v609_v62, 4 }
 0xa2e   :  { %v2345_v63 = vpop.eup %2344 }
 0xa2f   :  { %612 = vrot.lane.b32.xlu1 %v2345_v63, %s2544_s2 }
 0xaa1   :  { %v613_v2 = vpop.permute.xlu1 %612 }
 0xaa2   :  { %v615_v60 = vmul.f32 %v613_v2, %v595_v55 }
 0xaa4   :  { %v940_v5 = vrot.slane %v615_v60, 6  ;;  %620 = vrot.lane.b32.xlu1 %v615_v60, %s2544_s2  ;;  %617 = vrot.lane.b32.xlu0 %v615_v60, %s2547_s3 }
 0xaa6   :  { %v2902_v8 = vsel %vm273_vm6, %v950_v7, %v940_v5  ;;  %v962_v10 = vsel %vm266_vm3, %v940_v5, %v535_v37 }
 0xaa7   :  { %v2906_v3 = vsel %vm139_vm0, %v962_v10, %v936_v4 }
 0xb16   :  { %v621_v13 = vpop.permute.xlu1 %620  ;;  %v618_v15 = vpop.permute.xlu0 %617 }
 0xb17   :  { %v623_v18 = vsel %vm355_vm2, %v618_v15, %v621_v13 }
 0xb18   :  { %v625_v19 = vrot.slane %v623_v18, 4 }
 0xb1a   :  { %v627_v22 = vmul.f32 %v625_v19, %v2828_v45 }
 0xb1c   :  { %v628_v23 = vpack.c.bf16 %v627_v22, %v627_v22 }
 0xb1e   :  { %2110 = vmatmul.mubr.msk.bf16.vlgmr.msra.gmra.mrb[8].mxu1 %vm383_vm4, %v628_v23 }
 0xb1f   :  { %2126 = vmatpush3.bf16.msra.mxu1 %v2780_v36  ;;  %2133 = vmatprep.mubr.msk.bf16.mxu1 %vm2546_vm11, %v2542_v9 }
 0xb20   :  { %2127 = vmatprep.subr.bf16.mxu1 %v2542_v9 }
 0xb23   :  { %2128 = vmatpush3.bf16.msra.mxu1 %v2786_v38 }
 0xb24   :  { %2129 = vmatprep.subr.bf16.mxu1 %v2542_v9 }
 0xb27   :  { %2130 = vmatpush3.bf16.msra.mxu1 %v2799_v39 }
 0xb28   :  { %2131 = vmatprep.subr.bf16.mxu1 %v2542_v9 }
 0xb2b   :  { %2132 = vmatpush3.bf16.msra.mxu1 %v2808_v40 }
 0xbf1   :  { %v666_v26 = vpop.f32.mrb[8].mxu1 }
 0xbf2   :  { %v672_v27 = vadd.f32 %v666_v26, %v2756_v16  ;;  %v2111_v28 = vpop.f32.mrb[9].mxu1 }
 0xbf3   :  { %v669_v29 = vpop.f32.mrb[10].mxu1 }
 0xbf4   :  { %2346 = vtanh.f32 %v672_v27  ;;  %v2112_v30 = vpop.f32.mrb[11].mxu1 }
 0xbfe   :  { %v2347_v20 = vpop.eup %2346 }
 0xbff   :  { %v674_v33 = vmul.f32 %v2347_v20, %v2766_v31 }
 0xc01   :  { %v675_v34 = vadd.f32 %v674_v33, %v2772_v21 }
 0xc03   :  { %681 = vrot.lane.b32.xlu0 %v675_v34, %s2544_s2  ;;  %v679_v37 = vmul.f32 %v677_v35, %v675_v34 }
 0xc75   :  { %v682_v24 = vpop.permute.xlu0 %681 }
 0xc76   :  { %v684_v25 = vmul.f32 %v682_v24, %v675_v34 }
 0xc78   :  { %686 = vrot.lane.b32.xlu1 %v684_v25, %s2547_s3 }
 0xcea   :  { %v687_v41 = vpop.permute.xlu1 %686 }
 0xceb   :  { %v689_v43 = vadd.f32 %v687_v41, %v679_v37 }
 0xced   :  { %2348 = vtanh.f32 %v689_v43 }
 0xcf7   :  { %v2349_v44 = vpop.eup %2348 }
 0xcf8   :  { %692 = vrot.lane.b32.xlu0 %v2349_v44, %s2544_s2 }
 0xd6a   :  { %v693_v46 = vpop.permute.xlu0 %692 }
 0xd6b   :  { %v2926_v47 = vmul.f32 %v693_v46, %v675_v34 }
 0xd6d   :  { %700 = vrot.lane.b32.xlu0 %v2926_v47, %s2544_s2  ;;  %697 = vrot.lane.b32.xlu1 %v2926_v47, %s2547_s3 }
 0xddf   :  { %v701_v48 = vpop.permute.xlu0 %700  ;;  %v698_v49 = vpop.permute.xlu1 %697 }
 0xde0   :  { %v703_v17 = vsel %vm355_vm2, %v698_v49, %v701_v48 }
 0xde1   :  { %v704_v50 = vmul.f32 %v703_v17, %v2828_v45 }
 0xde3   :  { %v705_v51 = vpack.c.bf16 %v704_v50, %v704_v50 }
 0xde5   :  { %2122 = vmatmul.mubr.msk.bf16.vlgmr.msra.gmra.mrb[12].mxu0 %vm383_vm4, %v705_v51 }
 0xde6   :  { %2138 = vmatpush3.bf16.msra.mxu0 %v2780_v36  ;;  %2145 = vmatprep.mubr.msk.bf16.mxu0 %vm2546_vm11, %v2542_v9 }
 0xde7   :  { %2139 = vmatprep.subr.bf16.mxu0 %v2542_v9 }
 0xdea   :  { %2140 = vmatpush3.bf16.msra.mxu0 %v2786_v38 }
 0xdeb   :  { %2141 = vmatprep.subr.bf16.mxu0 %v2542_v9 }
 0xdee   :  { %2142 = vmatpush3.bf16.msra.mxu0 %v2799_v39 }
 0xdef   :  { %2143 = vmatprep.subr.bf16.mxu0 %v2542_v9 }
 0xdf2   :  { %2144 = vmatpush3.bf16.msra.mxu0 %v2808_v40  ;;  %v757_v40 = vrot.slane %v689_v43, 4 }
 0xdf3   :  { %2149 = vmatprep.subr.bf16.mxu0 %v2542_v9 }
 0xeb8   :  { %v743_v52 = vpop.f32.mrb[12].mxu0 }
 0xeb9   :  { %v750_v53 = vrot.slane %v743_v52, 4  ;;  %v2123_v36 = vpop.f32.mrb[13].mxu0 }
 0xeba   :  { %v746_v54 = vpop.f32.mrb[14].mxu0 }
 0xebb   :  { %v752_v55 = vadd.f32 %v750_v53, %v2756_v16  ;;  %v2124_v56 = vpop.f32.mrb[15].mxu0 }
 0xebd   :  { %2350 = vtanh.f32 %v752_v55 }
 0xec7   :  { %v2351_v57 = vpop.eup %2350 }
 0xec8   :  { %v754_v38 = vmul.f32 %v2351_v57, %v2766_v31 }
 0xeca   :  { %v755_v58 = vadd.f32 %v754_v38, %v2772_v21 }
 0xecc   :  { %761 = vrot.lane.b32.xlu1 %v755_v58, %s2544_s2  ;;  %v759_v61 = vmul.f32 %v757_v40, %v755_v58 }
 0xf3e   :  { %v762_v39 = vpop.permute.xlu1 %761 }
 0xf3f   :  { %v764_v59 = vmul.f32 %v762_v39, %v755_v58  ;;  %v2316_v39 = vld [vmem:[%s3273_s4 + $0x4] ss:$8 sps:$4 sm:$0xff]  }
 0xf40   :  { %1047 = vmatprep.subr.bf16.mxu1 %v2316_v39 }
 0xf41   :  { %766 = vrot.lane.b32.xlu0 %v764_v59, %s2547_s3  ;;  %v2319_v59 = vld [vmem:[%s3273_s4 + $0x14] ss:$8 sps:$4 sm:$0xff]  }
 0xfb3   :  { %v767_v62 = vpop.permute.xlu0 %766 }
 0xfb4   :  { %v769_v63 = vadd.f32 %v767_v62, %v759_v61  ;;  %v2317_v61 = vld [vmem:[%s3273_s4 + $0x10] ss:$8 sps:$4 sm:$0xff]   ;;  %v2322_v62 = vld [vmem:[%s3273_s4 + $0x24] ss:$8 sps:$4 sm:$0xff]  }
 0xfb6   :  { %2352 = vtanh.f32 %v769_v63  ;;  %v837_v30 = vrot.slane %v769_v63, 4  ;;  %v2320_v63 = vld [vmem:[%s3273_s4 + $0x20] ss:$8 sps:$4 sm:$0xff]  }
 0xfc0   :  { %v2353_v4 = vpop.eup %2352 }
 0xfc1   :  { %772 = vrot.lane.b32.xlu1 %v2353_v4, %s2544_s2 }
0x1033   :  { %v773_v16 = vpop.permute.xlu1 %772 }
0x1034   :  { %v2951_v1 = vmul.f32 %v773_v16, %v755_v58 }
0x1036   :  { %780 = vrot.lane.b32.xlu1 %v2951_v1, %s2544_s2  ;;  %777 = vrot.lane.b32.xlu0 %v2951_v1, %s2547_s3  ;;  %v942_v4 = vrot.slane %v2951_v1, 2  ;;  %v957_v1 = vrot.slane %v2818_v42, 4 }
0x10a8   :  { %v781_v2 = vpop.permute.xlu1 %780  ;;  %v778_v60 = vpop.permute.xlu0 %777 }
0x10a9   :  { %v783_v5 = vsel %vm355_vm2, %v778_v60, %v781_v2  ;;  %v2323_v60 = vld [vmem:[%s3273_s4 + $0x30] ss:$8 sps:$4 sm:$0xff]  }
0x10aa   :  { %v785_v6 = vrot.slane %v783_v5, 4  ;;  %v2325_v5 = vld [vmem:[%s3273_s4 + $0x34] ss:$8 sps:$4 sm:$0xff]  }
0x10ac   :  { %v787_v7 = vmul.f32 %v785_v6, %v2828_v45 }
0x10ae   :  { %v788_v10 = vpack.c.bf16 %v787_v7, %v787_v7 }
0x10b0   :  { %2134 = vmatmul.mubr.msk.bf16.vlgmr.msra.gmra.mrb[12].mxu1 %vm383_vm4, %v788_v10  ;;  %v952_v10 = vsel %vm266_vm3, %v2926_v47, %v942_v4 }
0x10b1   :  { %1079 = vmatprep.mubr.bf16.mxu1 %v2541_v0 }
0x1183   :  { %v826_v13 = vpop.f32.mrb[12].mxu1 }
0x1184   :  { %v832_v15 = vadd.f32 %v826_v13, %v2770_v32  ;;  %v2135_v18 = vpop.f32.mrb[13].mxu1 }
0x1185   :  { %v829_v19 = vpop.f32.mrb[14].mxu1 }
0x1186   :  { %2354 = vtanh.f32 %v832_v15  ;;  %v2136_v22 = vpop.f32.mrb[15].mxu1  ;;  %v955_v15 = vrot.slane %v2926_v47, 4 }
0x1190   :  { %v2355_v23 = vpop.eup %2354 }
0x1191   :  { %v834_v26 = vmul.f32 %v2355_v23, %v2766_v31 }
0x1193   :  { %v835_v27 = vadd.f32 %v834_v26, %v2772_v21 }
0x1195   :  { %841 = vrot.lane.b32.xlu0 %v835_v27, %s2544_s2  ;;  %v839_v0 = vmul.f32 %v837_v30, %v835_v27 }
0x1207   :  { %v842_v28 = vpop.permute.xlu0 %841 }
0x1208   :  { %v844_v29 = vmul.f32 %v842_v28, %v835_v27 }
0x120a   :  { %846 = vrot.lane.b32.xlu1 %v844_v29, %s2547_s3 }
0x127c   :  { %v847_v20 = vpop.permute.xlu1 %846 }
0x127d   :  { %v849_v33 = vadd.f32 %v847_v20, %v839_v0 }
0x127f   :  { %2356 = vtanh.f32 %v849_v33  ;;  %v917_v56 = vrot.slane %v849_v33, 4 }
0x1289   :  { %v2357_v34 = vpop.eup %2356 }
0x128a   :  { %852 = vrot.lane.b32.xlu0 %v2357_v34, %s2544_s2 }
0x12fc   :  { %v853_v24 = vpop.permute.xlu0 %852 }
0x12fd   :  { %v855_v25 = vmul.f32 %v853_v24, %v835_v27  ;;  %v964_v27 = vsel %vm273_vm6, %v2906_v3, %v957_v1  ;;  %v992_v3 = vld [vmem:[#allocation7] sm:$0x3] }
0x12fe   :  { %v997_v24 = vrot.slane %v992_v3, %v122_v12 }
0x12ff   :  { %860 = vrot.lane.b32.xlu0 %v855_v25, %s2544_s2  ;;  %857 = vrot.lane.b32.xlu1 %v855_v25, %s2547_s3  ;;  %v944_v16 = vrot.slane %v855_v25, 4 }
0x1301   :  { %v953_v13 = vsel %vm139_vm0, %v952_v10, %v944_v16  ;;  %v3053_v10 = vld [vmem:[%s3275_s6] sm:$0xff]  }
0x1371   :  { %v861_v35 = vpop.permute.xlu0 %860  ;;  %v858_v37 = vpop.permute.xlu1 %857 }
0x1372   :  { %v863_v41 = vsel %vm355_vm2, %v858_v37, %v861_v35 }
0x1373   :  { %v864_v43 = vmul.f32 %v863_v41, %v2828_v45 }
0x1375   :  { %v865_v44 = vpack.c.bf16 %v864_v43, %v864_v43 }
0x1377   :  { %2146 = vmatmul.mubr.msk.bf16.vlgmr.msra.gmra.mrb[16].mxu0 %vm383_vm4, %v865_v44 }
0x1378   :  { %2157 = vmatprep.mubr.msk.bf16.mxu0 %vm2546_vm11, %v2542_v9  ;;  %2150 = vmatpush3.bf16.msra.mxu0 %v3053_v10 }
0x1379   :  { %2151 = vmatprep.subr.bf16.mxu0 %v2542_v9 }
0x144a   :  { %v903_v46 = vpop.f32.mrb[16].mxu0 }
0x144b   :  { %v910_v48 = vrot.slane %v903_v46, 4  ;;  %v2147_v49 = vpop.f32.mrb[17].mxu0 }
0x144c   :  { %v906_v17 = vpop.f32.mrb[18].mxu0 }
0x144d   :  { %v912_v50 = vadd.f32 %v910_v48, %v2770_v32  ;;  %v2148_v51 = vpop.f32.mrb[19].mxu0  ;;  %v2314_v32 = vld [vmem:[%s3273_s4] ss:$8 sps:$4 sm:$0xff]  }
0x144e   :  { %1048 = vmatpush1.bf16.msra.mxu1 %v2314_v32 }
0x144f   :  { %2358 = vtanh.f32 %v912_v50  ;;  %1049 = vmatprep.subr.bf16.mxu1 %v2319_v59 }
0x1452   :  { %1050 = vmatpush1.bf16.msra.mxu1 %v2317_v61 }
0x1453   :  { %1051 = vmatprep.subr.bf16.mxu1 %v2322_v62 }
0x1456   :  { %1052 = vmatpush1.bf16.msra.mxu1 %v2320_v63 }
0x1457   :  { %1053 = vmatprep.subr.bf16.mxu1 %v2325_v5 }
0x1459   :  { %v2359_v52 = vpop.eup %2358 }
0x145a   :  { %v914_v53 = vmul.f32 %v2359_v52, %v2766_v31  ;;  %1054 = vmatpush1.bf16.msra.mxu1 %v2323_v60 }
0x145b   :  { %2161 = vmatprep.subr.bf16.mxu1 %v2542_v9 }
0x145c   :  { %v915_v36 = vadd.f32 %v914_v53, %v2772_v21 }
0x145e   :  { %921 = vrot.lane.b32.xlu1 %v915_v36, %s2544_s2  ;;  %v919_v57 = vmul.f32 %v917_v56, %v915_v36 }
0x14d0   :  { %v922_v54 = vpop.permute.xlu1 %921 }
0x14d1   :  { %v924_v55 = vmul.f32 %v922_v54, %v915_v36 }
0x14d3   :  { %926 = vrot.lane.b32.xlu0 %v924_v55, %s2547_s3 }
0x1545   :  { %v927_v38 = vpop.permute.xlu0 %926 }
0x1546   :  { %v929_v58 = vadd.f32 %v927_v38, %v919_v57 }
0x1548   :  { %2360 = vtanh.f32 %v929_v58 }
0x1552   :  { %v2361_v40 = vpop.eup %2360 }
0x1553   :  { %932 = vrot.lane.b32.xlu1 %v2361_v40, %s2544_s2 }
0x15c5   :  { %v933_v2 = vpop.permute.xlu1 %932 }
0x15c6   :  { %v935_v6 = vmul.f32 %v933_v2, %v915_v36 }
0x15c8   :  { %v947_v7 = vrot.slane %v935_v6, 6 }
0x15ca   :  { %v959_v18 = vsel %vm266_vm3, %v947_v7, %v855_v25  ;;  %v954_v19 = vsel %vm273_vm6, %v953_v13, %v947_v7  ;;  %v1001_v25 = vrot.slane %v992_v3, %v126_v14  ;;  %v3059_v13 = vld [vmem:[%s3275_s6 + $0x8] sm:$0xff]  }
0x15cb   :  { %v2298_v22 = vpack.i.bf16 %v954_v19, %v2902_v8  ;;  %v960_v23 = vsel %vm139_vm0, %v959_v18, %v942_v4  ;;  %2152 = vmatpush3.bf16.msra.mxu0 %v3059_v13  ;;  %v3081_v18 = vld [vmem:[%s3275_s6 + $0x18] sm:$0xff]  }
0x15cc   :  { %v961_v26 = vsel %vm273_vm6, %v960_v23, %v955_v15  ;;  %v3068_v15 = vld [vmem:[%s3275_s6 + $0x10] sm:$0xff]   ;;  %2153 = vmatprep.subr.bf16.mxu0 %v2542_v9 }
0x15cd   :  { %2299 = vrot.lane.b32.xlu0 %v2298_v22, %s2547_s3  ;;  %v2303_v28 = vpack.i.bf16 %v964_v27, %v961_v26 }
0x15cf   :  { %2304 = vrot.lane.b32.xlu1 %v2303_v28, %s2544_s2  ;;  %2154 = vmatpush3.bf16.msra.mxu0 %v3068_v15 }
0x15d0   :  { %2155 = vmatprep.subr.bf16.mxu0 %v2542_v9 }
0x15d3   :  { %2156 = vmatpush3.bf16.msra.mxu0 %v3081_v18 }
0x15d4   :  { %2173 = vmatprep.subr.bf16.mxu0 %v2542_v9 }
0x163f   :  { %v2300_v42 = vpop.permute.xlu0 %2299 }
0x1640   :  { %v2302_v29 = vunpack.i.h.bf16 %v2300_v42  ;;  %v2301_v30 = vunpack.i.l.bf16 %v2300_v42 }
0x1641   :  { %v2305_v47 = vpop.permute.xlu1 %2304 }
0x1642   :  { %v2307_v0 = vunpack.i.h.bf16 %v2305_v47  ;;  %v2306_v20 = vunpack.i.l.bf16 %v2305_v47 }
0x1644   :  { %v982_v8 = vsel %vm355_vm2, %v2302_v29, %v2307_v0  ;;  %v981_v33 = vsel %vm355_vm2, %v2301_v30, %v2306_v20 }
0x1645   :  { %v983_v34 = vpack.c.bf16 %v982_v8, %v981_v33 }
0x1647   :  { %1965 = vmatmul.mubr.msk.bf16.vlgmr.msra.gmra.mrb[16].mxu1 %vm383_vm4, %v983_v34 }
0x1648   :  { %2169 = vmatprep.mubr.msk.bf16.mxu1 %vm2546_vm11, %v2542_v9  ;;  %2162 = vmatpush3.bf16.msra.mxu1 %v3053_v10 }
0x1649   :  { %2163 = vmatprep.subr.bf16.mxu1 %v2542_v9 }
0x164c   :  { %2164 = vmatpush3.bf16.msra.mxu1 %v3059_v13 }
0x164d   :  { %2165 = vmatprep.subr.bf16.mxu1 %v2542_v9 }
0x1650   :  { %2166 = vmatpush3.bf16.msra.mxu1 %v3068_v15 }
0x1651   :  { %2167 = vmatprep.subr.bf16.mxu1 %v2542_v9 }
0x1654   :  { %2168 = vmatpush3.bf16.msra.mxu1 %v3081_v18 }
0x1655   :  { %2185 = vmatprep.subr.bf16.mxu1 %v2542_v9 }
0x171a   :  { %v1081_v35 = vpop.f32.mrb[16].mxu1 }
0x171b   :  { %v1082_v37 = vadd.f32 %v1081_v35, %v997_v24  ;;  %v1083_v41 = vpop.f32.mrb[17].mxu1 }
0x171c   :  { %v1084_v43 = vadd.f32 %v1083_v41, %v1001_v25  ;;  %v1085_v44 = vpop.f32.mrb[18].mxu1 }
0x171d   :  { %v1098_v46 = vrot.slane %v1082_v37, 4  ;;  %v1086_v48 = vadd.f32 %v1085_v44, %v997_v24  ;;  %v1087_v49 = vpop.f32.mrb[19].mxu1  ;;  %v1094_v17 = vrot.slane %v1082_v37, 6  ;;  %v1100_v52 = vrot.slane %v1082_v37, 2 }
0x171e   :  { %v1105_v50 = vrot.slane %v1084_v43, 4  ;;  %v1088_v51 = vadd.f32 %v1087_v49, %v1001_v25  ;;  %v1110_v54 = vrot.slane %v1084_v43, 6  ;;  %v1116_v14 = vrot.slane %v1084_v43, 2 }
0x171f   :  { %v1112_v53 = vrot.slane %v1086_v48, 4  ;;  %v1108_v36 = vrot.slane %v1086_v48, 6  ;;  %v1114_v55 = vrot.slane %v1086_v48, 2 }
0x1720   :  { %v1091_v12 = vrot.slane %v1088_v51, 4  ;;  %v1102_v56 = vrot.slane %v1088_v51, 2  ;;  %v1121_v11 = vsel %vm266_vm3, %v1098_v46, %v1088_v51  ;;  %v1096_v57 = vrot.slane %v1088_v51, 6 }
0x1721   :  { %v1122_v38 = vsel %vm139_vm0, %v1121_v11, %v1100_v52  ;;  %v1124_v58 = vsel %vm266_vm3, %v1086_v48, %v1105_v50  ;;  %v1127_v32 = vsel %vm266_vm3, %v1112_v53, %v1084_v43 }
0x1722   :  { %v1118_v39 = vsel %vm266_vm3, %v1082_v37, %v1091_v12  ;;  %v3035_v59 = vsel %vm273_vm6, %v1122_v38, %v1102_v56  ;;  %v1125_v40 = vsel %vm139_vm0, %v1124_v58, %v1108_v36  ;;  %v1128_v61 = vsel %vm139_vm0, %v1127_v32, %v1114_v55 }
0x1723   :  { %v1119_v62 = vsel %vm139_vm0, %v1118_v39, %v1094_v17  ;;  %v3041_v63 = vsel %vm273_vm6, %v1125_v40, %v1110_v54  ;;  %v3044_v4 = vsel %vm273_vm6, %v1128_v61, %v1116_v14  ;;  %vm1921_vm0 = vcmask 25600  }
0x1724   :  { %v1120_v16 = vsel %vm273_vm6, %v1119_v62, %v1096_v57 }
0x1725   :  { %2362 = vtanh.f32 %v1120_v16 }
0x172f   :  { %v2363_v2 = vpop.eup %2362 }
0x1730   :  { %v1139_v60 = vmul.f32 %v2363_v2, %v2766_v31 }
0x1732   :  { %v1140_v5 = vadd.f32 %v1139_v60, %v2772_v21 }
0x1734   :  { %1142 = vrot.lane.b32.xlu0 %v1140_v5, %s2544_s2 }
0x17a6   :  { %v1143_v6 = vpop.permute.xlu0 %1142 }
0x17a7   :  { %v1145_v7 = vmul.f32 %v1143_v6, %v1140_v5 }
0x17a9   :  { %2364 = vtanh.f32 %v1145_v7  ;;  %v1237_v23 = vrot.slane %v1145_v7, 4 }
0x17b3   :  { %v2365_v1 = vpop.eup %2364 }
0x17b4   :  { %1148 = vrot.lane.b32.xlu1 %v2365_v1, %s2545_s23 }
0x1826   :  { %v1149_v19 = vpop.permute.xlu1 %1148 }
0x1827   :  { %v1151_v22 = vmul.f32 %v1149_v19, %v1140_v5 }
0x1829   :  { %1156 = vrot.lane.b32.xlu1 %v1151_v22, %s2544_s2  ;;  %1153 = vrot.lane.b32.xlu0 %v1151_v22, %s2547_s3 }
0x182d   :  { %1238 = vrot.lane.b32.xlu1 %v1237_v23, %s2547_s3 }
0x189b   :  { %v1157_v26 = vpop.permute.xlu1 %1156  ;;  %v1154_v27 = vpop.permute.xlu0 %1153 }
0x189c   :  { %v1159_v28 = vsel %vm355_vm2, %v1154_v27, %v1157_v26 }
0x189d   :  { %v1160_v42 = vmul.f32 %v1159_v28, %v2828_v45 }
0x189f   :  { %v1161_v47 = vpack.c.bf16 %v1160_v42, %v1160_v42  ;;  %v1239_v37 = vpop.permute.xlu1 %1238 }
0x18a1   :  { %2158 = vmatmul.mubr.msk.bf16.vlgmr.msra.gmra.mrb[20].mxu0 %vm383_vm4, %v1161_v47 }
0x18a2   :  { %2174 = vmatpush3.bf16.msra.mxu0 %v3053_v10  ;;  %2181 = vmatprep.mubr.msk.bf16.mxu0 %vm2546_vm11, %v2542_v9 }
0x18a3   :  { %2175 = vmatprep.subr.bf16.mxu0 %v2542_v9 }
0x18a6   :  { %2176 = vmatpush3.bf16.msra.mxu0 %v3059_v13 }
0x18a7   :  { %2177 = vmatprep.subr.bf16.mxu0 %v2542_v9 }
0x18aa   :  { %2178 = vmatpush3.bf16.msra.mxu0 %v3068_v15 }
0x18ab   :  { %2179 = vmatprep.subr.bf16.mxu0 %v2542_v9 }
0x18ae   :  { %2180 = vmatpush3.bf16.msra.mxu0 %v3081_v18 }
0x18af   :  { %2197 = vmatprep.subr.bf16.mxu0 %v2542_v9 }
0x1974   :  { %v1223_v29 = vpop.f32.mrb[20].mxu0 }
0x1975   :  { %v1230_v30 = vrot.slane %v1223_v29, 4  ;;  %v2159_v0 = vpop.f32.mrb[21].mxu0 }
0x1976   :  { %v1226_v20 = vpop.f32.mrb[22].mxu0 }
0x1977   :  { %v1232_v8 = vadd.f32 %v1230_v30, %v1120_v16  ;;  %v2160_v33 = vpop.f32.mrb[23].mxu0 }
0x1979   :  { %2366 = vtanh.f32 %v1232_v8 }
0x1983   :  { %v2367_v34 = vpop.eup %2366 }
0x1984   :  { %v1234_v3 = vmul.f32 %v2367_v34, %v2766_v31 }
0x1986   :  { %v1235_v24 = vadd.f32 %v1234_v3, %v2772_v21 }
0x1988   :  { %1243 = vrot.lane.b32.xlu0 %v1235_v24, %s2544_s2  ;;  %v1241_v41 = vmul.f32 %v1239_v37, %v1235_v24 }
0x19fa   :  { %v1244_v25 = vpop.permute.xlu0 %1243 }
0x19fb   :  { %v1246_v35 = vmul.f32 %v1244_v25, %v1235_v24 }
0x19fd   :  { %1248 = vrot.lane.b32.xlu0 %v1246_v35, %s2547_s3 }
0x1a6f   :  { %v1249_v43 = vpop.permute.xlu0 %1248 }
0x1a70   :  { %v1251_v44 = vadd.f32 %v1249_v43, %v1241_v41 }
0x1a72   :  { %2368 = vtanh.f32 %v1251_v44  ;;  %v1319_v39 = vrot.slane %v1251_v44, 4 }
0x1a7c   :  { %v2369_v46 = vpop.eup %2368 }
0x1a7d   :  { %1254 = vrot.lane.b32.xlu1 %v2369_v46, %s2544_s2 }
0x1aef   :  { %v1255_v48 = vpop.permute.xlu1 %1254 }
0x1af0   :  { %v1257_v49 = vmul.f32 %v1255_v48, %v1235_v24 }
0x1af2   :  { %1262 = vrot.lane.b32.xlu1 %v1257_v49, %s2544_s2  ;;  %1259 = vrot.lane.b32.xlu0 %v1257_v49, %s2547_s3 }
0x1b64   :  { %v1263_v17 = vpop.permute.xlu1 %1262  ;;  %v1260_v50 = vpop.permute.xlu0 %1259 }
0x1b65   :  { %v1265_v51 = vsel %vm355_vm2, %v1260_v50, %v1263_v17 }
0x1b66   :  { %v1267_v52 = vrot.slane %v1265_v51, 4 }
0x1b68   :  { %v1269_v53 = vmul.f32 %v1267_v52, %v2828_v45 }
0x1b6a   :  { %v1270_v36 = vpack.c.bf16 %v1269_v53, %v1269_v53 }
0x1b6c   :  { %2170 = vmatmul.mubr.msk.bf16.vlgmr.msra.gmra.mrb[20].mxu1 %vm383_vm4, %v1270_v36 }
0x1b6d   :  { %2186 = vmatpush3.bf16.msra.mxu1 %v3053_v10  ;;  %2193 = vmatprep.mubr.msk.bf16.mxu1 %vm2546_vm11, %v2542_v9 }
0x1b6e   :  { %2187 = vmatprep.subr.bf16.mxu1 %v2542_v9 }
0x1b71   :  { %2188 = vmatpush3.bf16.msra.mxu1 %v3059_v13 }
0x1b72   :  { %2189 = vmatprep.subr.bf16.mxu1 %v2542_v9 }
0x1b75   :  { %2190 = vmatpush3.bf16.msra.mxu1 %v3068_v15 }
0x1b76   :  { %2191 = vmatprep.subr.bf16.mxu1 %v2542_v9 }
0x1b79   :  { %2192 = vmatpush3.bf16.msra.mxu1 %v3081_v18 }
0x1b7a   :  { %2209 = vmatprep.subr.bf16.mxu1 %v2542_v9 }
0x1c3f   :  { %v1308_v54 = vpop.f32.mrb[20].mxu1 }
0x1c40   :  { %v1314_v55 = vadd.f32 %v1308_v54, %v3035_v59  ;;  %v2171_v12 = vpop.f32.mrb[21].mxu1 }
0x1c41   :  { %v1311_v56 = vpop.f32.mrb[22].mxu1 }
0x1c42   :  { %2370 = vtanh.f32 %v1314_v55  ;;  %v2172_v11 = vpop.f32.mrb[23].mxu1 }
0x1c4c   :  { %v2371_v14 = vpop.eup %2370 }
0x1c4d   :  { %v1316_v57 = vmul.f32 %v2371_v14, %v2766_v31 }
0x1c4f   :  { %v1317_v38 = vadd.f32 %v1316_v57, %v2772_v21 }
0x1c51   :  { %1323 = vrot.lane.b32.xlu0 %v1317_v38, %s2544_s2  ;;  %v1321_v40 = vmul.f32 %v1319_v39, %v1317_v38 }
0x1cc3   :  { %v1324_v58 = vpop.permute.xlu0 %1323 }
0x1cc4   :  { %v1326_v32 = vmul.f32 %v1324_v58, %v1317_v38 }
0x1cc6   :  { %1328 = vrot.lane.b32.xlu1 %v1326_v32, %s2547_s3 }
0x1d38   :  { %v1329_v61 = vpop.permute.xlu1 %1328 }
0x1d39   :  { %v1331_v62 = vadd.f32 %v1329_v61, %v1321_v40 }
0x1d3b   :  { %2372 = vtanh.f32 %v1331_v62  ;;  %v1399_v8 = vrot.slane %v1331_v62, 4 }
0x1d45   :  { %v2373_v16 = vpop.eup %2372 }
0x1d46   :  { %1334 = vrot.lane.b32.xlu0 %v2373_v16, %s2544_s2 }
0x1db8   :  { %v1335_v2 = vpop.permute.xlu0 %1334 }
0x1db9   :  { %v1337_v60 = vmul.f32 %v1335_v2, %v1317_v38 }
0x1dbb   :  { %1342 = vrot.lane.b32.xlu0 %v1337_v60, %s2544_s2  ;;  %1339 = vrot.lane.b32.xlu1 %v1337_v60, %s2547_s3 }
0x1e2d   :  { %v1343_v5 = vpop.permute.xlu0 %1342  ;;  %v1340_v6 = vpop.permute.xlu1 %1339 }
0x1e2e   :  { %v1345_v7 = vsel %vm355_vm2, %v1340_v6, %v1343_v5 }
0x1e2f   :  { %v1346_v1 = vmul.f32 %v1345_v7, %v2828_v45 }
0x1e31   :  { %v1347_v19 = vpack.c.bf16 %v1346_v1, %v1346_v1 }
0x1e33   :  { %2182 = vmatmul.mubr.msk.bf16.vlgmr.msra.gmra.mrb[24].mxu0 %vm383_vm4, %v1347_v19 }
0x1e34   :  { %2198 = vmatpush3.bf16.msra.mxu0 %v3053_v10  ;;  %2205 = vmatprep.mubr.msk.bf16.mxu0 %vm2546_vm11, %v2542_v9 }
0x1e35   :  { %2199 = vmatprep.subr.bf16.mxu0 %v2542_v9 }
0x1e38   :  { %2200 = vmatpush3.bf16.msra.mxu0 %v3059_v13 }
0x1e39   :  { %2201 = vmatprep.subr.bf16.mxu0 %v2542_v9 }
0x1e3c   :  { %2202 = vmatpush3.bf16.msra.mxu0 %v3068_v15 }
0x1e3d   :  { %2203 = vmatprep.subr.bf16.mxu0 %v2542_v9 }
0x1e40   :  { %2204 = vmatpush3.bf16.msra.mxu0 %v3081_v18 }
0x1e41   :  { %2221 = vmatprep.subr.bf16.mxu0 %v2542_v9 }
0x1f06   :  { %v1385_v22 = vpop.f32.mrb[24].mxu0 }
0x1f07   :  { %v1392_v23 = vrot.slane %v1385_v22, 4  ;;  %v2183_v26 = vpop.f32.mrb[25].mxu0 }
0x1f08   :  { %v1388_v27 = vpop.f32.mrb[26].mxu0 }
0x1f09   :  { %v1394_v28 = vadd.f32 %v1392_v23, %v3035_v59  ;;  %v2184_v42 = vpop.f32.mrb[27].mxu0 }
0x1f0b   :  { %2374 = vtanh.f32 %v1394_v28 }
0x1f15   :  { %v2375_v47 = vpop.eup %2374 }
0x1f16   :  { %v1396_v29 = vmul.f32 %v2375_v47, %v2766_v31 }
0x1f18   :  { %v1397_v30 = vadd.f32 %v1396_v29, %v2772_v21 }
0x1f1a   :  { %1403 = vrot.lane.b32.xlu1 %v1397_v30, %s2544_s2  ;;  %v1401_v33 = vmul.f32 %v1399_v8, %v1397_v30 }
0x1f8c   :  { %v1404_v0 = vpop.permute.xlu1 %1403 }
0x1f8d   :  { %v1406_v20 = vmul.f32 %v1404_v0, %v1397_v30 }
0x1f8f   :  { %1408 = vrot.lane.b32.xlu0 %v1406_v20, %s2547_s3 }
0x2001   :  { %v1409_v34 = vpop.permute.xlu0 %1408 }
0x2002   :  { %v1411_v3 = vadd.f32 %v1409_v34, %v1401_v33 }
0x2004   :  { %2376 = vtanh.f32 %v1411_v3  ;;  %v1479_v12 = vrot.slane %v1411_v3, 4 }
0x200e   :  { %v2377_v24 = vpop.eup %2376 }
0x200f   :  { %1414 = vrot.lane.b32.xlu1 %v2377_v24, %s2544_s2 }
0x2081   :  { %v1415_v59 = vpop.permute.xlu1 %1414 }
0x2082   :  { %v1417_v25 = vmul.f32 %v1415_v59, %v1397_v30 }
0x2084   :  { %1422 = vrot.lane.b32.xlu1 %v1417_v25, %s2544_s2  ;;  %1419 = vrot.lane.b32.xlu0 %v1417_v25, %s2547_s3 }
0x20f6   :  { %v1423_v35 = vpop.permute.xlu1 %1422  ;;  %v1420_v37 = vpop.permute.xlu0 %1419 }
0x20f7   :  { %v1425_v41 = vsel %vm355_vm2, %v1420_v37, %v1423_v35 }
0x20f8   :  { %v1427_v43 = vrot.slane %v1425_v41, 4 }
0x20fa   :  { %v1429_v44 = vmul.f32 %v1427_v43, %v2828_v45 }
0x20fc   :  { %v1430_v46 = vpack.c.bf16 %v1429_v44, %v1429_v44 }
0x20fe   :  { %2194 = vmatmul.mubr.msk.bf16.vlgmr.msra.gmra.mrb[24].mxu1 %vm383_vm4, %v1430_v46 }
0x20ff   :  { %2210 = vmatpush3.bf16.msra.mxu1 %v3053_v10  ;;  %2217 = vmatprep.mubr.msk.bf16.mxu1 %vm2546_vm11, %v2542_v9 }
0x2100   :  { %2211 = vmatprep.subr.bf16.mxu1 %v2542_v9 }
0x2103   :  { %2212 = vmatpush3.bf16.msra.mxu1 %v3059_v13 }
0x2104   :  { %2213 = vmatprep.subr.bf16.mxu1 %v2542_v9 }
0x2107   :  { %2214 = vmatpush3.bf16.msra.mxu1 %v3068_v15 }
0x2108   :  { %2215 = vmatprep.subr.bf16.mxu1 %v2542_v9 }
0x210b   :  { %2216 = vmatpush3.bf16.msra.mxu1 %v3081_v18 }
0x21d1   :  { %v1468_v48 = vpop.f32.mrb[24].mxu1 }
0x21d2   :  { %v1474_v49 = vadd.f32 %v1468_v48, %v3041_v63  ;;  %v2195_v17 = vpop.f32.mrb[25].mxu1 }
0x21d3   :  { %v1471_v50 = vpop.f32.mrb[26].mxu1 }
0x21d4   :  { %2378 = vtanh.f32 %v1474_v49  ;;  %v2196_v51 = vpop.f32.mrb[27].mxu1 }
0x21de   :  { %v2379_v52 = vpop.eup %2378 }
0x21df   :  { %v1476_v53 = vmul.f32 %v2379_v52, %v2766_v31 }
0x21e1   :  { %v1477_v36 = vadd.f32 %v1476_v53, %v2772_v21 }
0x21e3   :  { %1483 = vrot.lane.b32.xlu0 %v1477_v36, %s2544_s2  ;;  %v1481_v56 = vmul.f32 %v1479_v12, %v1477_v36 }
0x2255   :  { %v1484_v54 = vpop.permute.xlu0 %1483 }
0x2256   :  { %v1486_v55 = vmul.f32 %v1484_v54, %v1477_v36 }
0x2258   :  { %1488 = vrot.lane.b32.xlu1 %v1486_v55, %s2547_s3 }
0x22ca   :  { %v1489_v11 = vpop.permute.xlu1 %1488 }
0x22cb   :  { %v1491_v14 = vadd.f32 %v1489_v11, %v1481_v56 }
0x22cd   :  { %2380 = vtanh.f32 %v1491_v14 }
0x22d7   :  { %v2381_v57 = vpop.eup %2380 }
0x22d8   :  { %1494 = vrot.lane.b32.xlu0 %v2381_v57, %s2544_s2 }
0x234a   :  { %v1495_v38 = vpop.permute.xlu0 %1494 }
0x234b   :  { %v1497_v58 = vmul.f32 %v1495_v38, %v1477_v36 }
0x234d   :  { %1502 = vrot.lane.b32.xlu0 %v1497_v58, %s2544_s2  ;;  %1499 = vrot.lane.b32.xlu1 %v1497_v58, %s2547_s3 }
0x23bf   :  { %v1503_v32 = vpop.permute.xlu0 %1502  ;;  %v1500_v39 = vpop.permute.xlu1 %1499 }
0x23c0   :  { %v1505_v40 = vsel %vm355_vm2, %v1500_v39, %v1503_v32 }
0x23c1   :  { %v1506_v61 = vmul.f32 %v1505_v40, %v2828_v45 }
0x23c3   :  { %v1507_v62 = vpack.c.bf16 %v1506_v61, %v1506_v61 }
0x23c5   :  { %2206 = vmatmul.mubr.msk.bf16.vlgmr.msra.gmra.mrb[28].mxu0 %vm383_vm4, %v1507_v62 }
0x23c6   :  { %2222 = vmatpush3.bf16.msra.mxu0 %v3053_v10  ;;  %2229 = vmatprep.mubr.msk.bf16.mxu0 %vm2546_vm11, %v2542_v9 }
0x23c7   :  { %2223 = vmatprep.subr.bf16.mxu0 %v2542_v9 }
0x23ca   :  { %2224 = vmatpush3.bf16.msra.mxu0 %v3059_v13 }
0x23cb   :  { %2225 = vmatprep.subr.bf16.mxu0 %v2542_v9 }
0x23ce   :  { %2226 = vmatpush3.bf16.msra.mxu0 %v3068_v15 }
0x23cf   :  { %2227 = vmatprep.subr.bf16.mxu0 %v2542_v9 }
0x23d2   :  { %2228 = vmatpush3.bf16.msra.mxu0 %v3081_v18  ;;  %v1559_v18 = vrot.slane %v1491_v14, 4 }
0x2498   :  { %v1545_v16 = vpop.f32.mrb[28].mxu0 }
0x2499   :  { %v1552_v2 = vrot.slane %v1545_v16, 4  ;;  %v2207_v60 = vpop.f32.mrb[29].mxu0  ;;  %v2549_v16 = vmov 0.0|0.0  }
0x249a   :  { %v1548_v5 = vpop.f32.mrb[30].mxu0  ;;  %2263 = vmatprep.subr.bf16.mxu1 %v2549_v16  ;;  %v1750_v60 = vld [vmem:[%s3276_s7 + $0x18] sm:$0xff]  ;;  %2275 = vmatprep.subr.bf16.mxu0 %v2549_v16 }
0x249b   :  { %v1554_v10 = vadd.f32 %v1552_v2, %v3041_v63  ;;  %v2208_v6 = vpop.f32.mrb[31].mxu0 }
0x249c   :  { %v1752_v6 = vld [vmem:[%s3276_s7 + $0x28] sm:$0xff] }
0x249d   :  { %2382 = vtanh.f32 %v1554_v10  ;;  %v1751_v10 = vld [vmem:[%s3276_s7 + $0x20] sm:$0xff] }
0x24a7   :  { %v2383_v7 = vpop.eup %2382 }
0x24a8   :  { %v1556_v1 = vmul.f32 %v2383_v7, %v2766_v31  ;;  %v2270_v7 = vpack.c.bf16 %v1752_v6, %v1751_v10 }
0x24aa   :  { %v1557_v13 = vadd.f32 %v1556_v1, %v2772_v21 }
0x24ac   :  { %1563 = vrot.lane.b32.xlu1 %v1557_v13, %s2544_s2  ;;  %v1561_v22 = vmul.f32 %v1559_v18, %v1557_v13  ;;  %v1837_v18 = vld [vmem:[%s3278_s9] sm:$0xff] }
0x251e   :  { %v1564_v15 = vpop.permute.xlu1 %1563 }
0x251f   :  { %v1566_v19 = vmul.f32 %v1564_v15, %v1557_v13  ;;  %v1754_v15 = vld [vmem:[%s3276_s7 + $0x38] sm:$0xff] }
0x2521   :  { %1568 = vrot.lane.b32.xlu0 %v1566_v19, %s2547_s3 }
0x2593   :  { %v1569_v23 = vpop.permute.xlu0 %1568 }
0x2594   :  { %v1571_v26 = vadd.f32 %v1569_v23, %v1561_v22  ;;  %v1838_v22 = vld [vmem:[%s3278_s9 + $0x8] sm:$0xff] }
0x2595   :  { %v2276_v23 = vpack.c.bf16 %v1838_v22, %v1837_v18 }
0x2596   :  { %2384 = vtanh.f32 %v1571_v26  ;;  %v1639_v43 = vrot.slane %v1571_v26, 4 }
0x25a0   :  { %v2385_v27 = vpop.eup %2384 }
0x25a1   :  { %1574 = vrot.lane.b32.xlu1 %v2385_v27, %s2544_s2 }
0x2613   :  { %v1575_v63 = vpop.permute.xlu1 %1574 }
0x2614   :  { %v1577_v28 = vmul.f32 %v1575_v63, %v1557_v13  ;;  %v1753_v13 = vld [vmem:[%s3276_s7 + $0x30] sm:$0xff] }
0x2615   :  { %v2273_v19 = vpack.c.bf16 %v1754_v15, %v1753_v13 }
0x2616   :  { %1582 = vrot.lane.b32.xlu1 %v1577_v28, %s2544_s2  ;;  %1579 = vrot.lane.b32.xlu0 %v1577_v28, %s2547_s3 }
0x2688   :  { %v1583_v42 = vpop.permute.xlu1 %1582  ;;  %v1580_v47 = vpop.permute.xlu0 %1579 }
0x2689   :  { %v1585_v29 = vsel %vm355_vm2, %v1580_v47, %v1583_v42 }
0x268a   :  { %v1587_v30 = vrot.slane %v1585_v29, 4 }
0x268c   :  { %v1589_v0 = vmul.f32 %v1587_v30, %v2828_v45  ;;  %v1839_v30 = vld [vmem:[%s3278_s9 + $0x10] sm:$0xff] }
0x268e   :  { %v1590_v20 = vpack.c.bf16 %v1589_v0, %v1589_v0  ;;  %v1840_v0 = vld [vmem:[%s3278_s9 + $0x18] sm:$0xff] }
0x2690   :  { %2218 = vmatmul.mubr.msk.bf16.vlgmr.msra.gmra.mrb[28].mxu1 %vm383_vm4, %v1590_v20  ;;  %v2279_v20 = vpack.c.bf16 %v1840_v0, %v1839_v30 }
0x2691   :  { %2249 = vmatprep.mubr.msk.f32.mxu1 %vm2546_vm11, %v2542_v9 }
0x2763   :  { %v1628_v8 = vpop.f32.mrb[28].mxu1 }
0x2764   :  { %v1634_v33 = vadd.f32 %v1628_v8, %v3044_v4  ;;  %v2219_v34 = vpop.f32.mrb[29].mxu1  ;;  %v1977_v8 = vld [vmem:[#allocation8] ss:$0 sm:$0xff] }
0x2765   :  { %v1631_v3 = vpop.f32.mrb[30].mxu1 }
0x2766   :  { %2386 = vtanh.f32 %v1634_v33  ;;  %v2220_v24 = vpop.f32.mrb[31].mxu1 }
0x2770   :  { %v2387_v59 = vpop.eup %2386 }
0x2771   :  { %v1636_v25 = vmul.f32 %v2387_v59, %v2766_v31  ;;  %v1979_v59 = vld [vmem:[#allocation10] ss:$0 sm:$0xff] }
0x2773   :  { %v1637_v35 = vadd.f32 %v1636_v25, %v2772_v21 }
0x2775   :  { %1643 = vrot.lane.b32.xlu0 %v1637_v35, %s2544_s2  ;;  %v1641_v44 = vmul.f32 %v1639_v43, %v1637_v35 }
0x27e7   :  { %v1644_v37 = vpop.permute.xlu0 %1643 }
0x27e8   :  { %v1646_v41 = vmul.f32 %v1644_v37, %v1637_v35 }
0x27ea   :  { %1648 = vrot.lane.b32.xlu1 %v1646_v41, %s2547_s3 }
0x285c   :  { %v1649_v46 = vpop.permute.xlu1 %1648 }
0x285d   :  { %v1651_v48 = vadd.f32 %v1649_v46, %v1641_v44 }
0x285f   :  { %2388 = vtanh.f32 %v1651_v48 }
0x2869   :  { %v2389_v49 = vpop.eup %2388 }
0x286a   :  { %1654 = vrot.lane.b32.xlu0 %v2389_v49, %s2544_s2 }
0x28dc   :  { %v1655_v17 = vpop.permute.xlu0 %1654 }
0x28dd   :  { %v1657_v50 = vmul.f32 %v1655_v17, %v1637_v35 }
0x28df   :  { %1662 = vrot.lane.b32.xlu0 %v1657_v50, %s2544_s2  ;;  %1659 = vrot.lane.b32.xlu1 %v1657_v50, %s2547_s3 }
0x2951   :  { %v1663_v51 = vpop.permute.xlu0 %1662  ;;  %v1660_v52 = vpop.permute.xlu1 %1659 }
0x2952   :  { %v1665_v53 = vsel %vm355_vm2, %v1660_v52, %v1663_v51 }
0x2953   :  { %v1666_v36 = vmul.f32 %v1665_v53, %v2828_v45 }
0x2955   :  { %v1667_v54 = vpack.c.bf16 %v1666_v36, %v1666_v36 }
0x2957   :  { %2230 = vmatmul.mubr.msk.bf16.vlgmr.msra.gmra.mrb[32].mxu0 %vm383_vm4, %v1667_v54 }
0x2958   :  { %2260 = vmatprep.mubr.msk.f32.mxu0 %vm2546_vm11, %v2542_v9  ;;  %v1719_v9 = vrot.slane %v1651_v48, 4  ;;  %2277 = vmatpush3.bf16.msra.mxu0 %v2276_v23 }
0x2959   :  { %2278 = vmatprep.subr.bf16.mxu0 %v2549_v16 }
0x295c   :  { %2280 = vmatpush3.bf16.msra.mxu0 %v2279_v20 }
0x2a2a   :  { %v1705_v55 = vpop.f32.mrb[32].mxu0 }
0x2a2b   :  { %v1712_v12 = vrot.slane %v1705_v55, 4  ;;  %v2231_v56 = vpop.f32.mrb[33].mxu0 }
0x2a2c   :  { %v1708_v11 = vpop.f32.mrb[34].mxu0 }
0x2a2d   :  { %v1714_v14 = vadd.f32 %v1712_v12, %v3044_v4  ;;  %v2232_v57 = vpop.f32.mrb[35].mxu0  ;;  %v1747_v4 = vld [vmem:[%s3276_s7] sm:$0xff] }
0x2a2f   :  { %2390 = vtanh.f32 %v1714_v14 }
0x2a39   :  { %v2391_v38 = vpop.eup %2390 }
0x2a3a   :  { %v1716_v58 = vmul.f32 %v2391_v38, %v2766_v31  ;;  %v1748_v31 = vld [vmem:[%s3276_s7 + $0x8] sm:$0xff] }
0x2a3b   :  { %v2264_v2 = vpack.c.bf16 %v1748_v31, %v1747_v4 }
0x2a3c   :  { %v1717_v32 = vadd.f32 %v1716_v58, %v2772_v21  ;;  %v1749_v21 = vld [vmem:[%s3276_s7 + $0x10] sm:$0xff] }
0x2a3d   :  { %2265 = vmatpush3.bf16.msra.mxu1 %v2264_v2  ;;  %v2267_v5 = vpack.c.bf16 %v1750_v60, %v1749_v21 }
0x2a3e   :  { %1723 = vrot.lane.b32.xlu1 %v1717_v32, %s2544_s2  ;;  %v1721_v40 = vmul.f32 %v1719_v9, %v1717_v32  ;;  %2266 = vmatprep.subr.bf16.mxu1 %v2549_v16 }
0x2a41   :  { %2268 = vmatpush3.bf16.msra.mxu1 %v2267_v5 }
0x2a42   :  { %2269 = vmatprep.subr.bf16.mxu1 %v2549_v16 }
0x2a45   :  { %2271 = vmatpush3.bf16.msra.mxu1 %v2270_v7 }
0x2a46   :  { %2272 = vmatprep.subr.bf16.mxu1 %v2549_v16 }
0x2a49   :  { %2274 = vmatpush3.bf16.msra.mxu1 %v2273_v19 }
0x2ab0   :  { %v1724_v45 = vpop.permute.xlu1 %1723 }
0x2ab1   :  { %v1726_v39 = vmul.f32 %v1724_v45, %v1717_v32 }
0x2ab3   :  { %1728 = vrot.lane.b32.xlu0 %v1726_v39, %s2547_s3 }
0x2b25   :  { %v1729_v61 = vpop.permute.xlu0 %1728 }
0x2b26   :  { %v1731_v62 = vadd.f32 %v1729_v61, %v1721_v40 }
0x2b28   :  { %2392 = vtanh.f32 %v1731_v62 }
0x2b32   :  { %v2393_v1 = vpop.eup %2392 }
0x2b33   :  { %1734 = vrot.lane.b32.xlu1 %v2393_v1, %s2544_s2 }
0x2ba5   :  { %v1735_v26 = vpop.permute.xlu1 %1734 }
0x2ba6   :  { %v1737_v27 = vmul.f32 %v1735_v26, %v1717_v32 }
0x2ba8   :  { %v1742_v63 = vrot.slane %v1737_v27, 2  ;;  %1739 = vrot.lane.b32.xlu0 %v1737_v27, %s2547_s3 }
0x2baa   :  { %1743 = vrot.lane.b32.xlu1 %v1742_v63, %s2544_s2  ;;  %s2550_s2 = smov [#allocation11]  }
0x2bab   :  { %s1929_s3 = sshll.u32 %s2550_s2, 4  ;;  %s1930_s3 = int_to_ptr.vmem [resolvable:$true] %s1929_s3 }
0x2bac   :  { %s2504_s26 = scalar_lea.vmem %s1930_s3, 32  ;;  %p2509_p13 = scmp.lt.s32.totalorder %s1930_s3, %s1930_s3 }
0x2bad   :  { %p2505_p12 = scmp.ne.s32.totalorder %s1930_s3, %s2504_s26  ;;  %p2510_p0 = scmp.lt.s32.totalorder %s2504_s26, %s2504_s26 }
0x2baf   :  { %p2511_p1 = por %p2510_p0, %p2509_p13 }
0x2bb1   :  { %p2512_p2 = pnand %p2511_p1, %p2505_p12 }
0x2c1a   :  { %v1740_v28 = vpop.permute.xlu0 %1739 }
0x2c1c   :  { %v1744_v42 = vpop.permute.xlu1 %1743 }
0x2c1d   :  { %v1746_v47 = vsel %vm355_vm2, %v1740_v28, %v1744_v42 }
0x2c1e   :  { %v1763_v29 = vrot.slane %v1746_v47, 4 }
0x2c20   :  { %2250 = vmatmul.mubr.msk.f32.vlgmr.msra.gmra.mrb[32].mxu1 %vm383_vm4, %v1763_v29 }
0x2cf3   :  { %v1832_v33 = vpop.f32.mrb[32].mxu1 }
0x2cf4   :  { %v1833_v34 = vadd.f32 %v1977_v8, %v1832_v33  ;;  %v2251_v3 = vpop.f32.mrb[33].mxu1 }
0x2cf6   :  { %v1836_v24 = vmax.f32 %v1833_v34, 0.0 }
0x2cf8   :  { %2261 = vmatmul.mubr.msk.f32.vlgmr.msra.gmra.mrb[36].mxu0 %vm355_vm2, %v1836_v24 }
0x2dcb   :  { %v1917_v25 = vpop.f32.mrb[36].mxu0 }
0x2dcc   :  { %v1918_v35 = vadd.f32 %v1979_v59, %v1917_v25  ;;  %v2262_v37 = vpop.f32.mrb[37].mxu0 }
0x2dce   :  { %1922 = vst.msk [vmem:[#allocation11] sm:$0x3] %vm1921_vm0, %v1918_v35 }
0x2dcf   :  { %2515 = shalt.err (!%p2512_p2)
}
0x2dd0   :  { %s2516_s0 = scalar_lea.hbm %s3280_s11, 32 }
0x2dd1   :  { %p2517_p3 = scmp.ne.s32.totalorder %s3280_s11, %s2516_s0  ;;  %p2520_p4 = scmp.lt.u32.totalorder %s2516_s0, %s3280_s11 }
0x2dd3   :  { %p2522_p5 = pnand %p2520_p4, %p2517_p3 }
0x2dd5   :  { %2525 = shalt.err (!%p2522_p5)
}
0x2dd6   :  { %1932 = dma.vmem_to_hbm [thread:$0]  %s1930_s3, 32, %s3280_s11, [#allocation4]  }
0x2dd7   :  { %2532 = dma.done.wait [#allocation4], 32  }
0x2dd8   :  { %2533 = vsyncadd [#allocation4], 4294967264 }
0x2dd9   :  { %1936 = vsyncpa [#allocation3], 1 }
0x2dda   :  { %1937 = vsyncpa [#allocation6], 1 }
0x2ddb   :  { %1938 = vsyncpa [#allocation9], 1 }
0x2ddc   :  { %1939 = vsyncpa [#allocation4], 1 }

</bundles_post_ra>
